<compile_context>
chip_gen: v5e
topology: v5e:2x2
jax: 0.10.0
libtpu: 0.0.40
codegen_flags: <defaults>
</compile_context>

<pallas_src>
import functools
import math

import jax
import jax.numpy as jnp
from jax.experimental import pallas as pl
from jax.experimental.pallas import tpu as pltpu

NUM_HEADS = 2
LANE = 128           # TPU lane width; head output is padded to this for lane-dense stores
NEG_INF = -1e9


def _layernorm(v, gamma, beta, eps=1e-12):
    mu = jnp.mean(v, axis=-1, keepdims=True)
    var = jnp.mean(jnp.square(v - mu), axis=-1, keepdims=True)
    return (v - mu) * jax.lax.rsqrt(var + eps) * gamma + beta


def commonlit_kernel(x_ref, amask_ref, smask_ref,
                     lng_ref, lnb_ref,
                     wqkv_ref, bqkv_ref, wo_ref, bo_ref,
                     w1_ref, b1_ref, w2_ref, b2_ref,
                     wh_ref, bh_ref,
                     out_ref, *, seq_len, num_heads):
    f32 = jnp.float32
    bf16 = jnp.bfloat16

    x = x_ref[0].astype(f32)          # [L, H]  summed embeddings (shipped bf16), L = bblk*S
    amask = amask_ref[0]              # [1, L]  attention (key-validity) mask, f32
    smask = smask_ref[0]              # [1, L]  pooling mask, f32

    L, H = x.shape
    nh = num_heads
    hd = H // nh
    S = seq_len
    bblk = L // S
    scale = 1.0 / math.sqrt(hd)

    lng = lng_ref[...]                # [3, H] layernorm gammas (emb, post-attn, post-ffn)
    lnb = lnb_ref[...]                # [3, H] layernorm betas

    def ln(v, idx):
        return _layernorm(v, lng[idx:idx + 1, :], lnb[idx:idx + 1, :])

    # --- backbone: embedding LayerNorm (f32 math) ---
    h0 = ln(x, 0)

    # --- backbone: fused QKV projection (one bf16 MXU matmul, f32 accumulation) ---
    # Split q/k/v from a bf16 result so the big [L, 3H] intermediate is half-width.
    qkv = (jnp.dot(h0.astype(bf16), wqkv_ref[...],
                   preferred_element_type=f32) + bqkv_ref[...]).astype(bf16)  # [L, 3H]
    q = qkv[:, :H] * scale            # fold 1/sqrt(hd) into q
    k = qkv[:, H:2 * H]
    v = qkv[:, 2 * H:]

    # heads -> leading (batched-matmul) axis; batch index = head*bblk + batch_row.
    # TODO(synk): at real sizes, a head-major wqkv column grouping would make this a
    # tile-aligned block slice instead of an XLU relayout.
    def to_heads(t):                  # [L, H] -> [nh*bblk, S, hd]
        return pltpu.einshape("mhd->hmd", t.reshape(L, nh, hd)).reshape(nh * bblk, S, hd)

    qh = to_heads(q)
    kh = to_heads(k)
    vh = to_heads(v)

    # Additive key-validity bias, broadcast over queries and heads: O(S) work,
    # [nh*bblk, 1, S]  (no L x L buffer).
    bias = ((1.0 - amask) * NEG_INF).reshape(bblk, 1, S)
    bias = jnp.broadcast_to(bias[None], (nh, bblk, 1, S)).reshape(nh * bblk, 1, S)

    # Per-(batch,head) S x S attention.
    s = jnp.einsum('bqd,bkd->bqk', qh, kh,
                   preferred_element_type=f32) + bias                    # [nh*bblk, S, S]
    s = s - jnp.max(s, axis=-1, keepdims=True)
    p = jnp.exp(s)
    p = p * pl.reciprocal(jnp.sum(p, axis=-1, keepdims=True), approx=True)
    ctx = jnp.einsum('bqk,bkd->bqd', p.astype(bf16), vh,
                     preferred_element_type=f32)                         # [nh*bblk, S, hd]
    ctx = pltpu.einshape("hmd->mhd", ctx.reshape(nh, L, hd)).reshape(L, H)

    attn_out = jnp.dot(ctx.astype(bf16), wo_ref[...],
                       preferred_element_type=f32) + bo_ref[...]
    h1 = ln(h0 + attn_out, 1)

    # --- backbone: feed-forward ---
    # TODO(synk): HF BERT 'gelu' is the exact erf form; tanh approximation used here.
    # TODO(synk): w1/w2 are the dominant weight bytes/FLOPs -- quantize to int8 (v5e/v6e)
    # or fp8 e4m3 (v7x, no MXU integer path) with per-column scales for a further win.
    f = jnp.dot(h1.astype(bf16), w1_ref[...],
                preferred_element_type=f32) + b1_ref[...]
    f = jax.nn.gelu(f, approximate=True).astype(bf16)                    # bf16 hidden
    f = jnp.dot(f, w2_ref[...], preferred_element_type=f32) + b2_ref[...]
    hidden = ln(h1 + f, 2)                                               # [L, H]

    # --- NLPPooling: masked mean over the sequence (VPU reduction, exact divide) ---
    m = smask.reshape(bblk, S)[:, :, None]                               # [bblk, S, 1]
    pooled_sum = jnp.sum(hidden.reshape(bblk, S, H) * m, axis=1)         # [bblk, H]
    denom = jnp.sum(m, axis=1)                                           # [bblk, 1]
    pooled = pooled_sum / jnp.maximum(denom, 1e-9)

    # --- HEAD (dense_01): Linear(finaldim, output_dim), lane-padded output ---
    out = jnp.dot(pooled.astype(bf16), wh_ref[...],
                  preferred_element_type=f32) + bh_ref[...]              # [bblk, OP]
    out_ref[0] = out.astype(out_ref.dtype)


def commonlit_forward(x_emb, attn_mask, pool_mask, params, *,
                      output_dim, num_heads=NUM_HEADS, block_batch=4,
                      single_buffer_weights=True, vmem_limit_bytes=None):
    """x_emb: [B,S,H] summed embeddings; attn_mask / pool_mask: [B,S]."""
    B, S, H = x_emb.shape
    (lng, lnb, wqkv, bqkv, wo, bo, w1, b1, w2, b2, wh, bh) = params
    OP = wh.shape[1]                              # lane-padded head output width

    # Per-generation guidance: block_batch ~2-4 on v7x (64 MiB VMEM), 4-8 on v5e/v6e.
    # Keep nblk >= 2 when possible so the "parallel" axis feeds both v7x TensorCores.
    bblk = max(1, min(block_batch, B if B < 2 else B // 2))
    nblk = pl.cdiv(B, bblk)
    bpad = nblk * bblk
    L = bblk * S

    if bpad != B:                                 # pad batch to a whole number of blocks
        pad = bpad - B
        x_emb = jnp.concatenate([x_emb, jnp.zeros((pad, S, H), x_emb.dtype)], axis=0)
        attn_mask = jnp.concatenate([attn_mask, jnp.zeros((pad, S), attn_mask.dtype)], axis=0)
        pool_mask = jnp.concatenate([pool_mask, jnp.zeros((pad, S), pool_mask.dtype)], axis=0)

    # Activations shipped bf16 (halves the dominant HBM stream); masks lane-dense [1, L].
    x3 = x_emb.astype(jnp.bfloat16).reshape(nblk, L, H)
    am3 = attn_mask.astype(jnp.float32).reshape(nblk, 1, L)
    sm3 = pool_mask.astype(jnp.float32).reshape(nblk, 1, L)

    weights = (lng, lnb, wqkv, bqkv, wo, bo, w1, b1, w2, b2, wh, bh)
    if single_buffer_weights:
        # Constant index map -> never re-fetched across the grid; single-buffer to halve
        # weight VMEM residency (matters on v7x's 64 MiB / v5e's 16 MiB scoped default).
        weight_specs = [pl.BlockSpec(p.shape, lambda i: (0, 0),
                                     pipeline_mode=pl.Buffered(1)) for p in weights]
    else:
        weight_specs = [pl.BlockSpec(p.shape, lambda i: (0, 0)) for p in weights]

    in_specs = [
        pl.BlockSpec((1, L, H), lambda i: (i, 0, 0)),
        pl.BlockSpec((1, 1, L), lambda i: (i, 0, 0)),
        pl.BlockSpec((1, 1, L), lambda i: (i, 0, 0)),
    ] + weight_specs

    if vmem_limit_bytes is None:
        # ~3/4 of physical VMEM, capped at 96 MiB (=> ~48 MiB on v7x, 96 MiB on v5e/v6e).
        try:
            cap = pltpu.get_tpu_info().vmem_capacity_bytes
            vmem_limit_bytes = min(cap * 3 // 4, 96 * 1024 * 1024)
        except Exception:
            vmem_limit_bytes = 48 * 1024 * 1024

    kernel = functools.partial(commonlit_kernel, seq_len=S, num_heads=num_heads)

    out = pl.pallas_call(
        kernel,
        out_shape=jax.ShapeDtypeStruct((nblk, bblk, OP), jnp.float32),
        grid_spec=pltpu.PrefetchScalarGridSpec(
            num_scalar_prefetch=0,
            grid=(nblk,),
            in_specs=in_specs,
            out_specs=pl.BlockSpec((1, bblk, OP), lambda i: (i, 0, 0)),
        ),
        compiler_params=pltpu.CompilerParams(
            dimension_semantics=("parallel",),     # batch blocks shard across v7x's 2 TCs
            vmem_limit_bytes=int(vmem_limit_bytes),
        ),
    )(x3, am3, sm3, *weights)

    return out.reshape(bpad, OP)[:B, :output_dim]


def init_params(key, H, F, O, *, std=0.02, wdtype=jnp.bfloat16):
    """Fused / stacked parameter slabs; matmul weights stored in bf16."""
    ks = jax.random.split(key, 5)
    OP = ((O + LANE - 1) // LANE) * LANE          # lane-dense head output width
    f32 = jnp.float32

    def w(k, shape):
        return (jax.random.normal(k, shape, f32) * std).astype(wdtype)

    lng = jnp.ones((3, H), f32)                   # layernorm gammas (emb, attn, ffn)
    lnb = jnp.zeros((3, H), f32)                  # layernorm betas
    wqkv = w(ks[0], (H, 3 * H))                   # fused Q|K|V projection
    bqkv = jnp.zeros((1, 3 * H), f32)
    wo = w(ks[1], (H, H));  bo = jnp.zeros((1, H), f32)
    w1 = w(ks[2], (H, F));  b1 = jnp.zeros((1, F), f32)
    w2 = w(ks[3], (F, H));  b2 = jnp.zeros((1, H), f32)
    wh_full = jax.random.normal(ks[4], (H, O), f32) * std
    wh = jnp.zeros((H, OP), f32).at[:, :O].set(wh_full).astype(wdtype)   # lane-padded head
    bh = jnp.zeros((1, OP), f32)
    return [lng, lnb, wqkv, bqkv, wo, bo, w1, b1, w2, b2, wh, bh]


if __name__ == "__main__":
    B, S, H, F, O, V = 2, 8, 32, 128, 2, 50       # F = 4*H (d_ff); O = output_dim
    # NOTE: demo shapes are far below MXU / (8,128) tiles; tune only at real backbone
    # shapes (H>=768, S=256-512, hd=64).

    key = jax.random.PRNGKey(0)
    k_ids, k_we, k_pe, k_te, k_par = jax.random.split(key, 5)

    # Deterministic synthetic inputs (what the PyTorch forward receives).
    summary_input_ids = jax.random.randint(k_ids, (B, S), 0, V)
    summary_token_type_ids = jnp.zeros((B, S), jnp.int32)
    summary_attention_mask = jnp.ones((B, S), jnp.float32).at[1, -1].set(0.0)
    summary_smask = summary_attention_mask        # pooling mask

    # Embedding tables (glue: gather done in plain JAX).
    word_emb = jax.random.normal(k_we, (V, H), jnp.float32) * 0.02
    pos_emb = jax.random.normal(k_pe, (S, H), jnp.float32) * 0.02
    type_emb = jax.random.normal(k_te, (2, H), jnp.float32) * 0.02
    x_emb = (word_emb[summary_input_ids]
             + pos_emb[None, :, :]
             + type_emb[summary_token_type_ids])   # [B, S, H]

    params = init_params(k_par, H, F, O)

    # TODO(synk): NLPPooling / DENSEHEAD1 / PromptAwareEncoder class bodies are not
    # provided in the source; masked-mean pooling + Linear head are used and the
    # add_prompt / span_pool / multilpool branches are disabled.
    fwd = jax.jit(functools.partial(commonlit_forward, output_dim=O))
    try:
        out = jax.block_until_ready(
            fwd(x_emb, summary_attention_mask, summary_smask, params))
    except Exception:
        # TODO(synk): some JAX versions reject pipeline_mode=pl.Buffered(1); fall back
        # to default double-buffered weight blocks (semantics identical).
        fwd = jax.jit(functools.partial(commonlit_forward, output_dim=O,
                                        single_buffer_weights=False))
        out = jax.block_until_ready(
            fwd(x_emb, summary_attention_mask, summary_smask, params))

    assert out.shape == (B, O) and bool(jnp.all(jnp.isfinite(out)))
    print("KERNEL_OK")
</pallas_src>

<mosaic_0001>
module attributes {stable_mosaic.version = 11 : i64} {
  func.func @commonlit_kernel(%arg0: i32, %arg1: memref<1x8x32xbf16, #tpu.memory_space<vmem>>, %arg2: memref<1x1x8xf32, #tpu.memory_space<vmem>>, %arg3: memref<1x1x8xf32, #tpu.memory_space<vmem>>, %arg4: memref<3x32xf32, #tpu.memory_space<vmem>>, %arg5: memref<3x32xf32, #tpu.memory_space<vmem>>, %arg6: memref<32x96xbf16, #tpu.memory_space<vmem>>, %arg7: memref<1x96xf32, #tpu.memory_space<vmem>>, %arg8: memref<32x32xbf16, #tpu.memory_space<vmem>>, %arg9: memref<1x32xf32, #tpu.memory_space<vmem>>, %arg10: memref<32x128xbf16, #tpu.memory_space<vmem>>, %arg11: memref<1x128xf32, #tpu.memory_space<vmem>>, %arg12: memref<128x32xbf16, #tpu.memory_space<vmem>>, %arg13: memref<1x32xf32, #tpu.memory_space<vmem>>, %arg14: memref<32x128xbf16, #tpu.memory_space<vmem>>, %arg15: memref<1x128xf32, #tpu.memory_space<vmem>>, %arg16: memref<1x1x128xf32, #tpu.memory_space<vmem>>) attributes {dimension_semantics = [#tpu.dimension_semantics<parallel>], iteration_bounds = array<i64: 2>, scalar_prefetch = 0 : i64, scratch_operands = 0 : i64, tpu.core_type = #tpu.core_type<tc>, window_params = [{transform_indices = @transform_0, window_bounds = array<i64: 1, 8, 32>}, {transform_indices = @transform_1, window_bounds = array<i64: 1, 1, 8>}, {transform_indices = @transform_2, window_bounds = array<i64: 1, 1, 8>}, {pipeline_mode = #tpu.pipeline_mode<synchronous>, transform_indices = @transform_3, window_bounds = array<i64: 3, 32>}, {pipeline_mode = #tpu.pipeline_mode<synchronous>, transform_indices = @transform_4, window_bounds = array<i64: 3, 32>}, {pipeline_mode = #tpu.pipeline_mode<synchronous>, transform_indices = @transform_5, window_bounds = array<i64: 32, 96>}, {pipeline_mode = #tpu.pipeline_mode<synchronous>, transform_indices = @transform_6, window_bounds = array<i64: 1, 96>}, {pipeline_mode = #tpu.pipeline_mode<synchronous>, transform_indices = @transform_7, window_bounds = array<i64: 32, 32>}, {pipeline_mode = #tpu.pipeline_mode<synchronous>, transform_indices = @transform_8, window_bounds = array<i64: 1, 32>}, {pipeline_mode = #tpu.pipeline_mode<synchronous>, transform_indices = @transform_9, window_bounds = array<i64: 32, 128>}, {pipeline_mode = #tpu.pipeline_mode<synchronous>, transform_indices = @transform_10, window_bounds = array<i64: 1, 128>}, {pipeline_mode = #tpu.pipeline_mode<synchronous>, transform_indices = @transform_11, window_bounds = array<i64: 128, 32>}, {pipeline_mode = #tpu.pipeline_mode<synchronous>, transform_indices = @transform_12, window_bounds = array<i64: 1, 32>}, {pipeline_mode = #tpu.pipeline_mode<synchronous>, transform_indices = @transform_13, window_bounds = array<i64: 32, 128>}, {pipeline_mode = #tpu.pipeline_mode<synchronous>, transform_indices = @transform_14, window_bounds = array<i64: 1, 128>}, {transform_indices = @transform_15, window_bounds = array<i64: 1, 1, 128>}]} {
    %c0 = arith.constant 0 : index
    %c0_0 = arith.constant 0 : index
    %c0_1 = arith.constant 0 : index
    %0 = vector.load %arg1[%c0, %c0_0, %c0_1] : memref<1x8x32xbf16, #tpu.memory_space<vmem>>, vector<1x8x32xbf16>
    %1 = vector.shape_cast %0 : vector<1x8x32xbf16> to vector<8x32xbf16>
    %2 = arith.extf %1 : vector<8x32xbf16> to vector<8x32xf32>
    %c0_2 = arith.constant 0 : index
    %c0_3 = arith.constant 0 : index
    %c0_4 = arith.constant 0 : index
    %3 = vector.load %arg2[%c0_2, %c0_3, %c0_4] : memref<1x1x8xf32, #tpu.memory_space<vmem>>, vector<1x1x8xf32>
    %4 = vector.shape_cast %3 : vector<1x1x8xf32> to vector<1x8xf32>
    %c0_5 = arith.constant 0 : index
    %c0_6 = arith.constant 0 : index
    %c0_7 = arith.constant 0 : index
    %5 = vector.load %arg3[%c0_5, %c0_6, %c0_7] : memref<1x1x8xf32, #tpu.memory_space<vmem>>, vector<1x1x8xf32>
    %6 = vector.shape_cast %5 : vector<1x1x8xf32> to vector<1x8xf32>
    %c0_8 = arith.constant 0 : index
    %c0_9 = arith.constant 0 : index
    %7 = vector.load %arg4[%c0_8, %c0_9] : memref<3x32xf32, #tpu.memory_space<vmem>>, vector<3x32xf32>
    %c0_10 = arith.constant 0 : index
    %c0_11 = arith.constant 0 : index
    %8 = vector.load %arg5[%c0_10, %c0_11] : memref<3x32xf32, #tpu.memory_space<vmem>>, vector<3x32xf32>
    %9 = vector.extract_strided_slice %7 {offsets = [0, 0], sizes = [1, 32], strides = [1, 1]} : vector<3x32xf32> to vector<1x32xf32>
    %10 = vector.extract_strided_slice %8 {offsets = [0, 0], sizes = [1, 32], strides = [1, 1]} : vector<3x32xf32> to vector<1x32xf32>
    %cst = arith.constant dense<0.000000e+00> : vector<8xf32>
    %11 = vector.multi_reduction <add>, %2, %cst [1] : vector<8x32xf32> to vector<8xf32>
    %12 = vector.shape_cast %11 : vector<8xf32> to vector<8x1xf32>
    %cst_12 = arith.constant 3.200000e+01 : f32
    %13 = vector.broadcast %cst_12 : f32 to vector<8x1xf32>
    %14 = arith.divf %12, %13 : vector<8x1xf32>
    %15 = vector.broadcast %14 : vector<8x1xf32> to vector<8x32xf32>
    %16 = arith.subf %2, %15 : vector<8x32xf32>
    %17 = arith.mulf %16, %16 : vector<8x32xf32>
    %cst_13 = arith.constant dense<0.000000e+00> : vector<8xf32>
    %18 = vector.multi_reduction <add>, %17, %cst_13 [1] : vector<8x32xf32> to vector<8xf32>
    %19 = vector.shape_cast %18 : vector<8xf32> to vector<8x1xf32>
    %cst_14 = arith.constant 3.200000e+01 : f32
    %20 = vector.broadcast %cst_14 : f32 to vector<8x1xf32>
    %21 = arith.divf %19, %20 : vector<8x1xf32>
    %22 = vector.broadcast %14 : vector<8x1xf32> to vector<8x32xf32>
    %23 = arith.subf %2, %22 : vector<8x32xf32>
    %cst_15 = arith.constant 9.99999996E-13 : f32
    %24 = vector.broadcast %cst_15 : f32 to vector<8x1xf32>
    %25 = arith.addf %21, %24 : vector<8x1xf32>
    %26 = math.rsqrt %25 : vector<8x1xf32>
    %27 = vector.broadcast %26 : vector<8x1xf32> to vector<8x32xf32>
    %28 = arith.mulf %23, %27 : vector<8x32xf32>
    %29 = vector.broadcast %9 : vector<1x32xf32> to vector<8x32xf32>
    %30 = arith.mulf %28, %29 : vector<8x32xf32>
    %31 = vector.broadcast %10 : vector<1x32xf32> to vector<8x32xf32>
    %32 = arith.addf %30, %31 : vector<8x32xf32>
    %33 = arith.truncf %32 : vector<8x32xf32> to vector<8x32xbf16>
    %c0_16 = arith.constant 0 : index
    %c0_17 = arith.constant 0 : index
    %34 = vector.load %arg6[%c0_16, %c0_17] : memref<32x96xbf16, #tpu.memory_space<vmem>>, vector<32x96xbf16>
    %cst_18 = arith.constant dense<0.000000e+00> : vector<8x96xf32>
    %35 = tpu.matmul %33, %34, %cst_18 {dimension_numbers = #tpu.dot_dimension_numbers<[1], [0], [0], [1], [0, 0, 1, 1], [], []>} : vector<8x32xbf16>, vector<32x96xbf16>, vector<8x96xf32> -> vector<8x96xf32>
    %c0_19 = arith.constant 0 : index
    %c0_20 = arith.constant 0 : index
    %36 = vector.load %arg7[%c0_19, %c0_20] : memref<1x96xf32, #tpu.memory_space<vmem>>, vector<1x96xf32>
    %37 = vector.broadcast %36 : vector<1x96xf32> to vector<8x96xf32>
    %38 = arith.addf %35, %37 : vector<8x96xf32>
    %39 = arith.truncf %38 : vector<8x96xf32> to vector<8x96xbf16>
    %40 = vector.extract_strided_slice %39 {offsets = [0, 0], sizes = [8, 32], strides = [1, 1]} : vector<8x96xbf16> to vector<8x32xbf16>
    %cst_21 = arith.constant 2.500000e-01 : bf16
    %41 = vector.broadcast %cst_21 : bf16 to vector<8x32xbf16>
    %42 = arith.mulf %40, %41 : vector<8x32xbf16>
    %43 = vector.extract_strided_slice %39 {offsets = [0, 32], sizes = [8, 32], strides = [1, 1]} : vector<8x96xbf16> to vector<8x32xbf16>
    %44 = vector.extract_strided_slice %39 {offsets = [0, 64], sizes = [8, 32], strides = [1, 1]} : vector<8x96xbf16> to vector<8x32xbf16>
    %45 = vector.shape_cast %42 : vector<8x32xbf16> to vector<8x2x16xbf16>
    %46 = tpu.transpose %45, [1, 0, 2] : vector<8x2x16xbf16> -> vector<2x8x16xbf16>
    %47 = vector.shape_cast %43 : vector<8x32xbf16> to vector<8x2x16xbf16>
    %48 = tpu.transpose %47, [1, 0, 2] : vector<8x2x16xbf16> -> vector<2x8x16xbf16>
    %49 = vector.shape_cast %44 : vector<8x32xbf16> to vector<8x2x16xbf16>
    %50 = tpu.transpose %49, [1, 0, 2] : vector<8x2x16xbf16> -> vector<2x8x16xbf16>
    %cst_22 = arith.constant 1.000000e+00 : f32
    %51 = vector.broadcast %cst_22 : f32 to vector<1x8xf32>
    %52 = arith.subf %51, %4 : vector<1x8xf32>
    %cst_23 = arith.constant -1.000000e+09 : f32
    %53 = vector.broadcast %cst_23 : f32 to vector<1x8xf32>
    %54 = arith.mulf %52, %53 : vector<1x8xf32>
    %55 = vector.shape_cast %54 : vector<1x8xf32> to vector<1x1x8xf32>
    %56 = vector.shape_cast %55 : vector<1x1x8xf32> to vector<1x1x1x8xf32>
    %57 = vector.shape_cast %56 : vector<1x1x1x8xf32> to vector<1x1x1x8xf32>
    %58 = vector.broadcast %57 : vector<1x1x1x8xf32> to vector<2x1x1x8xf32>
    %59 = vector.shape_cast %58 : vector<2x1x1x8xf32> to vector<2x1x8xf32>
    "tpu.trace_start"() <{level = 10 : i32, message = "bqd,bkd->bqk"}> : () -> ()
    %cst_24 = arith.constant dense<0.000000e+00> : vector<2x8x8xf32>
    %60 = tpu.matmul %46, %48, %cst_24 {dimension_numbers = #tpu.dot_dimension_numbers<[2], [2], [1], [1], [0, 0, 0, 1, 1, 1], [0], [0]>} : vector<2x8x16xbf16>, vector<2x8x16xbf16>, vector<2x8x8xf32> -> vector<2x8x8xf32>
    "tpu.trace_stop"() : () -> ()
    %61 = vector.broadcast %59 : vector<2x1x8xf32> to vector<2x8x8xf32>
    %62 = arith.addf %60, %61 : vector<2x8x8xf32>
    %cst_25 = arith.constant dense<0xFF800000> : vector<2x8xf32>
    %63 = vector.multi_reduction <maximumf>, %62, %cst_25 [2] : vector<2x8x8xf32> to vector<2x8xf32>
    %64 = vector.shape_cast %63 : vector<2x8xf32> to vector<2x8x1xf32>
    %65 = vector.broadcast %64 : vector<2x8x1xf32> to vector<2x8x8xf32>
    %66 = arith.subf %62, %65 : vector<2x8x8xf32>
    %67 = math.exp %66 : vector<2x8x8xf32>
    %cst_26 = arith.constant dense<0.000000e+00> : vector<2x8xf32>
    %68 = vector.multi_reduction <add>, %67, %cst_26 [2] : vector<2x8x8xf32> to vector<2x8xf32>
    %69 = vector.shape_cast %68 : vector<2x8xf32> to vector<2x8x1xf32>
    %70 = tpu.reciprocal %69 {approx = true} : vector<2x8x1xf32> -> vector<2x8x1xf32>
    %71 = vector.broadcast %70 : vector<2x8x1xf32> to vector<2x8x8xf32>
    %72 = arith.mulf %67, %71 : vector<2x8x8xf32>
    %73 = arith.truncf %72 : vector<2x8x8xf32> to vector<2x8x8xbf16>
    "tpu.trace_start"() <{level = 10 : i32, message = "bqk,bkd->bqd"}> : () -> ()
    %cst_27 = arith.constant dense<0.000000e+00> : vector<2x8x16xf32>
    %74 = tpu.matmul %73, %50, %cst_27 {dimension_numbers = #tpu.dot_dimension_numbers<[2], [1], [1], [2], [0, 0, 0, 1, 1, 2], [0], [0]>} : vector<2x8x8xbf16>, vector<2x8x16xbf16>, vector<2x8x16xf32> -> vector<2x8x16xf32>
    "tpu.trace_stop"() : () -> ()
    %75 = tpu.transpose %74, [1, 0, 2] : vector<2x8x16xf32> -> vector<8x2x16xf32>
    %76 = vector.shape_cast %75 : vector<8x2x16xf32> to vector<8x32xf32>
    %77 = arith.truncf %76 : vector<8x32xf32> to vector<8x32xbf16>
    %c0_28 = arith.constant 0 : index
    %c0_29 = arith.constant 0 : index
    %78 = vector.load %arg8[%c0_28, %c0_29] : memref<32x32xbf16, #tpu.memory_space<vmem>>, vector<32x32xbf16>
    %cst_30 = arith.constant dense<0.000000e+00> : vector<8x32xf32>
    %79 = tpu.matmul %77, %78, %cst_30 {dimension_numbers = #tpu.dot_dimension_numbers<[1], [0], [0], [1], [0, 0, 1, 1], [], []>} : vector<8x32xbf16>, vector<32x32xbf16>, vector<8x32xf32> -> vector<8x32xf32>
    %c0_31 = arith.constant 0 : index
    %c0_32 = arith.constant 0 : index
    %80 = vector.load %arg9[%c0_31, %c0_32] : memref<1x32xf32, #tpu.memory_space<vmem>>, vector<1x32xf32>
    %81 = vector.broadcast %80 : vector<1x32xf32> to vector<8x32xf32>
    %82 = arith.addf %79, %81 : vector<8x32xf32>
    %83 = arith.addf %32, %82 : vector<8x32xf32>
    %84 = vector.extract_strided_slice %7 {offsets = [1, 0], sizes = [1, 32], strides = [1, 1]} : vector<3x32xf32> to vector<1x32xf32>
    %85 = vector.extract_strided_slice %8 {offsets = [1, 0], sizes = [1, 32], strides = [1, 1]} : vector<3x32xf32> to vector<1x32xf32>
    %cst_33 = arith.constant dense<0.000000e+00> : vector<8xf32>
    %86 = vector.multi_reduction <add>, %83, %cst_33 [1] : vector<8x32xf32> to vector<8xf32>
    %87 = vector.shape_cast %86 : vector<8xf32> to vector<8x1xf32>
    %cst_34 = arith.constant 3.200000e+01 : f32
    %88 = vector.broadcast %cst_34 : f32 to vector<8x1xf32>
    %89 = arith.divf %87, %88 : vector<8x1xf32>
    %90 = vector.broadcast %89 : vector<8x1xf32> to vector<8x32xf32>
    %91 = arith.subf %83, %90 : vector<8x32xf32>
    %92 = arith.mulf %91, %91 : vector<8x32xf32>
    %cst_35 = arith.constant dense<0.000000e+00> : vector<8xf32>
    %93 = vector.multi_reduction <add>, %92, %cst_35 [1] : vector<8x32xf32> to vector<8xf32>
    %94 = vector.shape_cast %93 : vector<8xf32> to vector<8x1xf32>
    %cst_36 = arith.constant 3.200000e+01 : f32
    %95 = vector.broadcast %cst_36 : f32 to vector<8x1xf32>
    %96 = arith.divf %94, %95 : vector<8x1xf32>
    %97 = vector.broadcast %89 : vector<8x1xf32> to vector<8x32xf32>
    %98 = arith.subf %83, %97 : vector<8x32xf32>
    %cst_37 = arith.constant 9.99999996E-13 : f32
    %99 = vector.broadcast %cst_37 : f32 to vector<8x1xf32>
    %100 = arith.addf %96, %99 : vector<8x1xf32>
    %101 = math.rsqrt %100 : vector<8x1xf32>
    %102 = vector.broadcast %101 : vector<8x1xf32> to vector<8x32xf32>
    %103 = arith.mulf %98, %102 : vector<8x32xf32>
    %104 = vector.broadcast %84 : vector<1x32xf32> to vector<8x32xf32>
    %105 = arith.mulf %103, %104 : vector<8x32xf32>
    %106 = vector.broadcast %85 : vector<1x32xf32> to vector<8x32xf32>
    %107 = arith.addf %105, %106 : vector<8x32xf32>
    %108 = arith.truncf %107 : vector<8x32xf32> to vector<8x32xbf16>
    %c0_38 = arith.constant 0 : index
    %c0_39 = arith.constant 0 : index
    %109 = vector.load %arg10[%c0_38, %c0_39] : memref<32x128xbf16, #tpu.memory_space<vmem>>, vector<32x128xbf16>
    %cst_40 = arith.constant dense<0.000000e+00> : vector<8x128xf32>
    %110 = tpu.matmul %108, %109, %cst_40 {dimension_numbers = #tpu.dot_dimension_numbers<[1], [0], [0], [1], [0, 0, 1, 1], [], []>} : vector<8x32xbf16>, vector<32x128xbf16>, vector<8x128xf32> -> vector<8x128xf32>
    %c0_41 = arith.constant 0 : index
    %c0_42 = arith.constant 0 : index
    %111 = vector.load %arg11[%c0_41, %c0_42] : memref<1x128xf32, #tpu.memory_space<vmem>>, vector<1x128xf32>
    %112 = vector.broadcast %111 : vector<1x128xf32> to vector<8x128xf32>
    %113 = arith.addf %110, %112 : vector<8x128xf32>
    %114 = arith.mulf %113, %113 : vector<8x128xf32>
    %115 = arith.mulf %113, %114 : vector<8x128xf32>
    %cst_43 = arith.constant 4.471500e-02 : f32
    %116 = vector.broadcast %cst_43 : f32 to vector<8x128xf32>
    %117 = arith.mulf %116, %115 : vector<8x128xf32>
    %118 = arith.addf %113, %117 : vector<8x128xf32>
    %cst_44 = arith.constant 0.797884583 : f32
    %119 = vector.broadcast %cst_44 : f32 to vector<8x128xf32>
    %120 = arith.mulf %119, %118 : vector<8x128xf32>
    %121 = math.tanh %120 : vector<8x128xf32>
    %cst_45 = arith.constant 1.000000e+00 : f32
    %122 = vector.broadcast %cst_45 : f32 to vector<8x128xf32>
    %123 = arith.addf %122, %121 : vector<8x128xf32>
    %cst_46 = arith.constant 5.000000e-01 : f32
    %124 = vector.broadcast %cst_46 : f32 to vector<8x128xf32>
    %125 = arith.mulf %124, %123 : vector<8x128xf32>
    %126 = arith.mulf %113, %125 : vector<8x128xf32>
    %127 = arith.truncf %126 : vector<8x128xf32> to vector<8x128xbf16>
    %c0_47 = arith.constant 0 : index
    %c0_48 = arith.constant 0 : index
    %128 = vector.load %arg12[%c0_47, %c0_48] : memref<128x32xbf16, #tpu.memory_space<vmem>>, vector<128x32xbf16>
    %cst_49 = arith.constant dense<0.000000e+00> : vector<8x32xf32>
    %129 = tpu.matmul %127, %128, %cst_49 {dimension_numbers = #tpu.dot_dimension_numbers<[1], [0], [0], [1], [0, 0, 1, 1], [], []>} : vector<8x128xbf16>, vector<128x32xbf16>, vector<8x32xf32> -> vector<8x32xf32>
    %c0_50 = arith.constant 0 : index
    %c0_51 = arith.constant 0 : index
    %130 = vector.load %arg13[%c0_50, %c0_51] : memref<1x32xf32, #tpu.memory_space<vmem>>, vector<1x32xf32>
    %131 = vector.broadcast %130 : vector<1x32xf32> to vector<8x32xf32>
    %132 = arith.addf %129, %131 : vector<8x32xf32>
    %133 = arith.addf %107, %132 : vector<8x32xf32>
    %134 = vector.extract_strided_slice %7 {offsets = [2, 0], sizes = [1, 32], strides = [1, 1]} : vector<3x32xf32> to vector<1x32xf32>
    %135 = vector.extract_strided_slice %8 {offsets = [2, 0], sizes = [1, 32], strides = [1, 1]} : vector<3x32xf32> to vector<1x32xf32>
    %cst_52 = arith.constant dense<0.000000e+00> : vector<8xf32>
    %136 = vector.multi_reduction <add>, %133, %cst_52 [1] : vector<8x32xf32> to vector<8xf32>
    %137 = vector.shape_cast %136 : vector<8xf32> to vector<8x1xf32>
    %cst_53 = arith.constant 3.200000e+01 : f32
    %138 = vector.broadcast %cst_53 : f32 to vector<8x1xf32>
    %139 = arith.divf %137, %138 : vector<8x1xf32>
    %140 = vector.broadcast %139 : vector<8x1xf32> to vector<8x32xf32>
    %141 = arith.subf %133, %140 : vector<8x32xf32>
    %142 = arith.mulf %141, %141 : vector<8x32xf32>
    %cst_54 = arith.constant dense<0.000000e+00> : vector<8xf32>
    %143 = vector.multi_reduction <add>, %142, %cst_54 [1] : vector<8x32xf32> to vector<8xf32>
    %144 = vector.shape_cast %143 : vector<8xf32> to vector<8x1xf32>
    %cst_55 = arith.constant 3.200000e+01 : f32
    %145 = vector.broadcast %cst_55 : f32 to vector<8x1xf32>
    %146 = arith.divf %144, %145 : vector<8x1xf32>
    %147 = vector.broadcast %139 : vector<8x1xf32> to vector<8x32xf32>
    %148 = arith.subf %133, %147 : vector<8x32xf32>
    %cst_56 = arith.constant 9.99999996E-13 : f32
    %149 = vector.broadcast %cst_56 : f32 to vector<8x1xf32>
    %150 = arith.addf %146, %149 : vector<8x1xf32>
    %151 = math.rsqrt %150 : vector<8x1xf32>
    %152 = vector.broadcast %151 : vector<8x1xf32> to vector<8x32xf32>
    %153 = arith.mulf %148, %152 : vector<8x32xf32>
    %154 = vector.broadcast %134 : vector<1x32xf32> to vector<8x32xf32>
    %155 = arith.mulf %153, %154 : vector<8x32xf32>
    %156 = vector.broadcast %135 : vector<1x32xf32> to vector<8x32xf32>
    %157 = arith.addf %155, %156 : vector<8x32xf32>
    %158 = vector.shape_cast %6 : vector<1x8xf32> to vector<1x8x1xf32>
    %159 = vector.shape_cast %157 : vector<8x32xf32> to vector<1x8x32xf32>
    %160 = vector.broadcast %158 : vector<1x8x1xf32> to vector<1x8x32xf32>
    %161 = arith.mulf %159, %160 : vector<1x8x32xf32>
    %cst_57 = arith.constant dense<0.000000e+00> : vector<1x32xf32>
    %162 = vector.multi_reduction <add>, %161, %cst_57 [1] : vector<1x8x32xf32> to vector<1x32xf32>
    %cst_58 = arith.constant dense<0.000000e+00> : vector<1x1xf32>
    %163 = vector.multi_reduction <add>, %158, %cst_58 [1] : vector<1x8x1xf32> to vector<1x1xf32>
    %cst_59 = arith.constant 9.99999971E-10 : f32
    %164 = vector.broadcast %cst_59 : f32 to vector<1x1xf32>
    %165 = arith.maximumf %163, %164 : vector<1x1xf32>
    %166 = vector.broadcast %165 : vector<1x1xf32> to vector<1x32xf32>
    %167 = arith.divf %162, %166 : vector<1x32xf32>
    %168 = arith.truncf %167 : vector<1x32xf32> to vector<1x32xbf16>
    %c0_60 = arith.constant 0 : index
    %c0_61 = arith.constant 0 : index
    %169 = vector.load %arg14[%c0_60, %c0_61] : memref<32x128xbf16, #tpu.memory_space<vmem>>, vector<32x128xbf16>
    %cst_62 = arith.constant dense<0.000000e+00> : vector<1x128xf32>
    %170 = tpu.matmul %168, %169, %cst_62 {dimension_numbers = #tpu.dot_dimension_numbers<[1], [0], [0], [1], [0, 0, 1, 1], [], []>} : vector<1x32xbf16>, vector<32x128xbf16>, vector<1x128xf32> -> vector<1x128xf32>
    %c0_63 = arith.constant 0 : index
    %c0_64 = arith.constant 0 : index
    %171 = vector.load %arg15[%c0_63, %c0_64] : memref<1x128xf32, #tpu.memory_space<vmem>>, vector<1x128xf32>
    %172 = arith.addf %170, %171 : vector<1x128xf32>
    %c0_65 = arith.constant 0 : index
    %c0_66 = arith.constant 0 : index
    %c0_67 = arith.constant 0 : index
    %173 = vector.load %arg16[%c0_65, %c0_66, %c0_67] : memref<1x1x128xf32, #tpu.memory_space<vmem>>, vector<1x1x128xf32>
    %174 = vector.shape_cast %173 : vector<1x1x128xf32> to vector<1x128xf32>
    %175 = vector.shape_cast %172 : vector<1x128xf32> to vector<1x1x128xf32>
    tpu.vector_store %arg16[%c0_65, %c0_66, %c0_67], %175 {strides = array<i32>} : memref<1x1x128xf32, #tpu.memory_space<vmem>>, vector<1x1x128xf32>,
    return
  }
  func.func @transform_0(%arg0: i32) -> (i32, i32, i32) {
    %c0_i32 = arith.constant 0 : i32
    %c0_i32_0 = arith.constant 0 : i32
    %c0_i32_1 = arith.constant 0 : i32
    return %arg0, %c0_i32, %c0_i32_0 : i32, i32, i32
  }
  func.func @transform_1(%arg0: i32) -> (i32, i32, i32) {
    %c0_i32 = arith.constant 0 : i32
    %c0_i32_0 = arith.constant 0 : i32
    %c0_i32_1 = arith.constant 0 : i32
    return %arg0, %c0_i32, %c0_i32_0 : i32, i32, i32
  }
  func.func @transform_2(%arg0: i32) -> (i32, i32, i32) {
    %c0_i32 = arith.constant 0 : i32
    %c0_i32_0 = arith.constant 0 : i32
    %c0_i32_1 = arith.constant 0 : i32
    return %arg0, %c0_i32, %c0_i32_0 : i32, i32, i32
  }
  func.func @transform_3(%arg0: i32) -> (i32, i32) {
    %c0_i32 = arith.constant 0 : i32
    %c0_i32_0 = arith.constant 0 : i32
    %c0_i32_1 = arith.constant 0 : i32
    return %c0_i32, %c0_i32_0 : i32, i32
  }
  func.func @transform_4(%arg0: i32) -> (i32, i32) {
    %c0_i32 = arith.constant 0 : i32
    %c0_i32_0 = arith.constant 0 : i32
    %c0_i32_1 = arith.constant 0 : i32
    return %c0_i32, %c0_i32_0 : i32, i32
  }
  func.func @transform_5(%arg0: i32) -> (i32, i32) {
    %c0_i32 = arith.constant 0 : i32
    %c0_i32_0 = arith.constant 0 : i32
    %c0_i32_1 = arith.constant 0 : i32
    return %c0_i32, %c0_i32_0 : i32, i32
  }
  func.func @transform_6(%arg0: i32) -> (i32, i32) {
    %c0_i32 = arith.constant 0 : i32
    %c0_i32_0 = arith.constant 0 : i32
    %c0_i32_1 = arith.constant 0 : i32
    return %c0_i32, %c0_i32_0 : i32, i32
  }
  func.func @transform_7(%arg0: i32) -> (i32, i32) {
    %c0_i32 = arith.constant 0 : i32
    %c0_i32_0 = arith.constant 0 : i32
    %c0_i32_1 = arith.constant 0 : i32
    return %c0_i32, %c0_i32_0 : i32, i32
  }
  func.func @transform_8(%arg0: i32) -> (i32, i32) {
    %c0_i32 = arith.constant 0 : i32
    %c0_i32_0 = arith.constant 0 : i32
    %c0_i32_1 = arith.constant 0 : i32
    return %c0_i32, %c0_i32_0 : i32, i32
  }
  func.func @transform_9(%arg0: i32) -> (i32, i32) {
    %c0_i32 = arith.constant 0 : i32
    %c0_i32_0 = arith.constant 0 : i32
    %c0_i32_1 = arith.constant 0 : i32
    return %c0_i32, %c0_i32_0 : i32, i32
  }
  func.func @transform_10(%arg0: i32) -> (i32, i32) {
    %c0_i32 = arith.constant 0 : i32
    %c0_i32_0 = arith.constant 0 : i32
    %c0_i32_1 = arith.constant 0 : i32
    return %c0_i32, %c0_i32_0 : i32, i32
  }
  func.func @transform_11(%arg0: i32) -> (i32, i32) {
    %c0_i32 = arith.constant 0 : i32
    %c0_i32_0 = arith.constant 0 : i32
    %c0_i32_1 = arith.constant 0 : i32
    return %c0_i32, %c0_i32_0 : i32, i32
  }
  func.func @transform_12(%arg0: i32) -> (i32, i32) {
    %c0_i32 = arith.constant 0 : i32
    %c0_i32_0 = arith.constant 0 : i32
    %c0_i32_1 = arith.constant 0 : i32
    return %c0_i32, %c0_i32_0 : i32, i32
  }
  func.func @transform_13(%arg0: i32) -> (i32, i32) {
    %c0_i32 = arith.constant 0 : i32
    %c0_i32_0 = arith.constant 0 : i32
    %c0_i32_1 = arith.constant 0 : i32
    return %c0_i32, %c0_i32_0 : i32, i32
  }
  func.func @transform_14(%arg0: i32) -> (i32, i32) {
    %c0_i32 = arith.constant 0 : i32
    %c0_i32_0 = arith.constant 0 : i32
    %c0_i32_1 = arith.constant 0 : i32
    return %c0_i32, %c0_i32_0 : i32, i32
  }
  func.func @transform_15(%arg0: i32) -> (i32, i32, i32) {
    %c0_i32 = arith.constant 0 : i32
    %c0_i32_0 = arith.constant 0 : i32
    %c0_i32_1 = arith.constant 0 : i32
    return %arg0, %c0_i32, %c0_i32_0 : i32, i32, i32
  }
}

module attributes {stable_mosaic.version = 11 : i64} {
  func.func @commonlit_kernel(%arg0: i32, %arg1: memref<1x8x32xbf16, #tpu.memory_space<vmem>>, %arg2: memref<1x1x8xf32, #tpu.memory_space<vmem>>, %arg3: memref<1x1x8xf32, #tpu.memory_space<vmem>>, %arg4: memref<3x32xf32, #tpu.memory_space<vmem>>, %arg5: memref<3x32xf32, #tpu.memory_space<vmem>>, %arg6: memref<32x96xbf16, #tpu.memory_space<vmem>>, %arg7: memref<1x96xf32, #tpu.memory_space<vmem>>, %arg8: memref<32x32xbf16, #tpu.memory_space<vmem>>, %arg9: memref<1x32xf32, #tpu.memory_space<vmem>>, %arg10: memref<32x128xbf16, #tpu.memory_space<vmem>>, %arg11: memref<1x128xf32, #tpu.memory_space<vmem>>, %arg12: memref<128x32xbf16, #tpu.memory_space<vmem>>, %arg13: memref<1x32xf32, #tpu.memory_space<vmem>>, %arg14: memref<32x128xbf16, #tpu.memory_space<vmem>>, %arg15: memref<1x128xf32, #tpu.memory_space<vmem>>, %arg16: memref<1x1x128xf32, #tpu.memory_space<vmem>>) attributes {dimension_semantics = [#tpu.dimension_semantics<parallel>], iteration_bounds = array<i64: 2>, scalar_prefetch = 0 : i64, scratch_operands = 0 : i64, tpu.core_type = #tpu.core_type<tc>, window_params = [{transform_indices = @transform_0, window_bounds = array<i64: 1, 8, 32>}, {transform_indices = @transform_1, window_bounds = array<i64: 1, 1, 8>}, {transform_indices = @transform_2, window_bounds = array<i64: 1, 1, 8>}, {pipeline_mode = #tpu.pipeline_mode<synchronous>, transform_indices = @transform_3, window_bounds = array<i64: 3, 32>}, {pipeline_mode = #tpu.pipeline_mode<synchronous>, transform_indices = @transform_4, window_bounds = array<i64: 3, 32>}, {pipeline_mode = #tpu.pipeline_mode<synchronous>, transform_indices = @transform_5, window_bounds = array<i64: 32, 96>}, {pipeline_mode = #tpu.pipeline_mode<synchronous>, transform_indices = @transform_6, window_bounds = array<i64: 1, 96>}, {pipeline_mode = #tpu.pipeline_mode<synchronous>, transform_indices = @transform_7, window_bounds = array<i64: 32, 32>}, {pipeline_mode = #tpu.pipeline_mode<synchronous>, transform_indices = @transform_8, window_bounds = array<i64: 1, 32>}, {pipeline_mode = #tpu.pipeline_mode<synchronous>, transform_indices = @transform_9, window_bounds = array<i64: 32, 128>}, {pipeline_mode = #tpu.pipeline_mode<synchronous>, transform_indices = @transform_10, window_bounds = array<i64: 1, 128>}, {pipeline_mode = #tpu.pipeline_mode<synchronous>, transform_indices = @transform_11, window_bounds = array<i64: 128, 32>}, {pipeline_mode = #tpu.pipeline_mode<synchronous>, transform_indices = @transform_12, window_bounds = array<i64: 1, 32>}, {pipeline_mode = #tpu.pipeline_mode<synchronous>, transform_indices = @transform_13, window_bounds = array<i64: 32, 128>}, {pipeline_mode = #tpu.pipeline_mode<synchronous>, transform_indices = @transform_14, window_bounds = array<i64: 1, 128>}, {transform_indices = @transform_15, window_bounds = array<i64: 1, 1, 128>}]} {
    %c0 = arith.constant 0 : index
    %c0_0 = arith.constant 0 : index
    %c0_1 = arith.constant 0 : index
    %0 = vector.load %arg1[%c0, %c0_0, %c0_1] : memref<1x8x32xbf16, #tpu.memory_space<vmem>>, vector<1x8x32xbf16>
    %1 = vector.shape_cast %0 : vector<1x8x32xbf16> to vector<8x32xbf16>
    %2 = arith.extf %1 : vector<8x32xbf16> to vector<8x32xf32>
    %c0_2 = arith.constant 0 : index
    %c0_3 = arith.constant 0 : index
    %c0_4 = arith.constant 0 : index
    %3 = vector.load %arg2[%c0_2, %c0_3, %c0_4] : memref<1x1x8xf32, #tpu.memory_space<vmem>>, vector<1x1x8xf32>
    %4 = vector.shape_cast %3 : vector<1x1x8xf32> to vector<1x8xf32>
    %c0_5 = arith.constant 0 : index
    %c0_6 = arith.constant 0 : index
    %c0_7 = arith.constant 0 : index
    %5 = vector.load %arg3[%c0_5, %c0_6, %c0_7] : memref<1x1x8xf32, #tpu.memory_space<vmem>>, vector<1x1x8xf32>
    %6 = vector.shape_cast %5 : vector<1x1x8xf32> to vector<1x8xf32>
    %c0_8 = arith.constant 0 : index
    %c0_9 = arith.constant 0 : index
    %7 = vector.load %arg4[%c0_8, %c0_9] : memref<3x32xf32, #tpu.memory_space<vmem>>, vector<3x32xf32>
    %c0_10 = arith.constant 0 : index
    %c0_11 = arith.constant 0 : index
    %8 = vector.load %arg5[%c0_10, %c0_11] : memref<3x32xf32, #tpu.memory_space<vmem>>, vector<3x32xf32>
    %9 = vector.extract_strided_slice %7 {offsets = [0, 0], sizes = [1, 32], strides = [1, 1]} : vector<3x32xf32> to vector<1x32xf32>
    %10 = vector.extract_strided_slice %8 {offsets = [0, 0], sizes = [1, 32], strides = [1, 1]} : vector<3x32xf32> to vector<1x32xf32>
    %cst = arith.constant dense<0.000000e+00> : vector<8xf32>
    %11 = vector.multi_reduction <add>, %2, %cst [1] : vector<8x32xf32> to vector<8xf32>
    %12 = vector.shape_cast %11 : vector<8xf32> to vector<8x1xf32>
    %cst_12 = arith.constant 3.200000e+01 : f32
    %13 = vector.broadcast %cst_12 : f32 to vector<8x1xf32>
    %14 = arith.divf %12, %13 : vector<8x1xf32>
    %15 = vector.broadcast %14 : vector<8x1xf32> to vector<8x32xf32>
    %16 = arith.subf %2, %15 : vector<8x32xf32>
    %17 = arith.mulf %16, %16 : vector<8x32xf32>
    %cst_13 = arith.constant dense<0.000000e+00> : vector<8xf32>
    %18 = vector.multi_reduction <add>, %17, %cst_13 [1] : vector<8x32xf32> to vector<8xf32>
    %19 = vector.shape_cast %18 : vector<8xf32> to vector<8x1xf32>
    %cst_14 = arith.constant 3.200000e+01 : f32
    %20 = vector.broadcast %cst_14 : f32 to vector<8x1xf32>
    %21 = arith.divf %19, %20 : vector<8x1xf32>
    %22 = vector.broadcast %14 : vector<8x1xf32> to vector<8x32xf32>
    %23 = arith.subf %2, %22 : vector<8x32xf32>
    %cst_15 = arith.constant 9.99999996E-13 : f32
    %24 = vector.broadcast %cst_15 : f32 to vector<8x1xf32>
    %25 = arith.addf %21, %24 : vector<8x1xf32>
    %26 = math.rsqrt %25 : vector<8x1xf32>
    %27 = vector.broadcast %26 : vector<8x1xf32> to vector<8x32xf32>
    %28 = arith.mulf %23, %27 : vector<8x32xf32>
    %29 = vector.broadcast %9 : vector<1x32xf32> to vector<8x32xf32>
    %30 = arith.mulf %28, %29 : vector<8x32xf32>
    %31 = vector.broadcast %10 : vector<1x32xf32> to vector<8x32xf32>
    %32 = arith.addf %30, %31 : vector<8x32xf32>
    %33 = arith.truncf %32 : vector<8x32xf32> to vector<8x32xbf16>
    %c0_16 = arith.constant 0 : index
    %c0_17 = arith.constant 0 : index
    %34 = vector.load %arg6[%c0_16, %c0_17] : memref<32x96xbf16, #tpu.memory_space<vmem>>, vector<32x96xbf16>
    %cst_18 = arith.constant dense<0.000000e+00> : vector<8x96xf32>
    %35 = tpu.matmul %33, %34, %cst_18 {dimension_numbers = #tpu.dot_dimension_numbers<[1], [0], [0], [1], [0, 0, 1, 1], [], []>} : vector<8x32xbf16>, vector<32x96xbf16>, vector<8x96xf32> -> vector<8x96xf32>
    %c0_19 = arith.constant 0 : index
    %c0_20 = arith.constant 0 : index
    %36 = vector.load %arg7[%c0_19, %c0_20] : memref<1x96xf32, #tpu.memory_space<vmem>>, vector<1x96xf32>
    %37 = vector.broadcast %36 : vector<1x96xf32> to vector<8x96xf32>
    %38 = arith.addf %35, %37 : vector<8x96xf32>
    %39 = arith.truncf %38 : vector<8x96xf32> to vector<8x96xbf16>
    %40 = vector.extract_strided_slice %39 {offsets = [0, 0], sizes = [8, 32], strides = [1, 1]} : vector<8x96xbf16> to vector<8x32xbf16>
    %cst_21 = arith.constant 2.500000e-01 : bf16
    %41 = vector.broadcast %cst_21 : bf16 to vector<8x32xbf16>
    %42 = arith.mulf %40, %41 : vector<8x32xbf16>
    %43 = vector.extract_strided_slice %39 {offsets = [0, 32], sizes = [8, 32], strides = [1, 1]} : vector<8x96xbf16> to vector<8x32xbf16>
    %44 = vector.extract_strided_slice %39 {offsets = [0, 64], sizes = [8, 32], strides = [1, 1]} : vector<8x96xbf16> to vector<8x32xbf16>
    %45 = vector.shape_cast %42 : vector<8x32xbf16> to vector<8x2x16xbf16>
    %46 = tpu.transpose %45, [1, 0, 2] : vector<8x2x16xbf16> -> vector<2x8x16xbf16>
    %47 = vector.shape_cast %43 : vector<8x32xbf16> to vector<8x2x16xbf16>
    %48 = tpu.transpose %47, [1, 0, 2] : vector<8x2x16xbf16> -> vector<2x8x16xbf16>
    %49 = vector.shape_cast %44 : vector<8x32xbf16> to vector<8x2x16xbf16>
    %50 = tpu.transpose %49, [1, 0, 2] : vector<8x2x16xbf16> -> vector<2x8x16xbf16>
    %cst_22 = arith.constant 1.000000e+00 : f32
    %51 = vector.broadcast %cst_22 : f32 to vector<1x8xf32>
    %52 = arith.subf %51, %4 : vector<1x8xf32>
    %cst_23 = arith.constant -1.000000e+09 : f32
    %53 = vector.broadcast %cst_23 : f32 to vector<1x8xf32>
    %54 = arith.mulf %52, %53 : vector<1x8xf32>
    %55 = vector.shape_cast %54 : vector<1x8xf32> to vector<1x1x8xf32>
    %56 = vector.shape_cast %55 : vector<1x1x8xf32> to vector<1x1x1x8xf32>
    %57 = vector.shape_cast %56 : vector<1x1x1x8xf32> to vector<1x1x1x8xf32>
    %58 = vector.broadcast %57 : vector<1x1x1x8xf32> to vector<2x1x1x8xf32>
    %59 = vector.shape_cast %58 : vector<2x1x1x8xf32> to vector<2x1x8xf32>
    "tpu.trace_start"() <{level = 10 : i32, message = "bqd,bkd->bqk"}> : () -> ()
    %cst_24 = arith.constant dense<0.000000e+00> : vector<2x8x8xf32>
    %60 = tpu.matmul %46, %48, %cst_24 {dimension_numbers = #tpu.dot_dimension_numbers<[2], [2], [1], [1], [0, 0, 0, 1, 1, 1], [0], [0]>} : vector<2x8x16xbf16>, vector<2x8x16xbf16>, vector<2x8x8xf32> -> vector<2x8x8xf32>
    "tpu.trace_stop"() : () -> ()
    %61 = vector.broadcast %59 : vector<2x1x8xf32> to vector<2x8x8xf32>
    %62 = arith.addf %60, %61 : vector<2x8x8xf32>
    %cst_25 = arith.constant dense<0xFF800000> : vector<2x8xf32>
    %63 = vector.multi_reduction <maximumf>, %62, %cst_25 [2] : vector<2x8x8xf32> to vector<2x8xf32>
    %64 = vector.shape_cast %63 : vector<2x8xf32> to vector<2x8x1xf32>
    %65 = vector.broadcast %64 : vector<2x8x1xf32> to vector<2x8x8xf32>
    %66 = arith.subf %62, %65 : vector<2x8x8xf32>
    %67 = math.exp %66 : vector<2x8x8xf32>
    %cst_26 = arith.constant dense<0.000000e+00> : vector<2x8xf32>
    %68 = vector.multi_reduction <add>, %67, %cst_26 [2] : vector<2x8x8xf32> to vector<2x8xf32>
    %69 = vector.shape_cast %68 : vector<2x8xf32> to vector<2x8x1xf32>
    %70 = tpu.reciprocal %69 {approx = true} : vector<2x8x1xf32> -> vector<2x8x1xf32>
    %71 = vector.broadcast %70 : vector<2x8x1xf32> to vector<2x8x8xf32>
    %72 = arith.mulf %67, %71 : vector<2x8x8xf32>
    %73 = arith.truncf %72 : vector<2x8x8xf32> to vector<2x8x8xbf16>
    "tpu.trace_start"() <{level = 10 : i32, message = "bqk,bkd->bqd"}> : () -> ()
    %cst_27 = arith.constant dense<0.000000e+00> : vector<2x8x16xf32>
    %74 = tpu.matmul %73, %50, %cst_27 {dimension_numbers = #tpu.dot_dimension_numbers<[2], [1], [1], [2], [0, 0, 0, 1, 1, 2], [0], [0]>} : vector<2x8x8xbf16>, vector<2x8x16xbf16>, vector<2x8x16xf32> -> vector<2x8x16xf32>
    "tpu.trace_stop"() : () -> ()
    %75 = tpu.transpose %74, [1, 0, 2] : vector<2x8x16xf32> -> vector<8x2x16xf32>
    %76 = vector.shape_cast %75 : vector<8x2x16xf32> to vector<8x32xf32>
    %77 = arith.truncf %76 : vector<8x32xf32> to vector<8x32xbf16>
    %c0_28 = arith.constant 0 : index
    %c0_29 = arith.constant 0 : index
    %78 = vector.load %arg8[%c0_28, %c0_29] : memref<32x32xbf16, #tpu.memory_space<vmem>>, vector<32x32xbf16>
    %cst_30 = arith.constant dense<0.000000e+00> : vector<8x32xf32>
    %79 = tpu.matmul %77, %78, %cst_30 {dimension_numbers = #tpu.dot_dimension_numbers<[1], [0], [0], [1], [0, 0, 1, 1], [], []>} : vector<8x32xbf16>, vector<32x32xbf16>, vector<8x32xf32> -> vector<8x32xf32>
    %c0_31 = arith.constant 0 : index
    %c0_32 = arith.constant 0 : index
    %80 = vector.load %arg9[%c0_31, %c0_32] : memref<1x32xf32, #tpu.memory_space<vmem>>, vector<1x32xf32>
    %81 = vector.broadcast %80 : vector<1x32xf32> to vector<8x32xf32>
    %82 = arith.addf %79, %81 : vector<8x32xf32>
    %83 = arith.addf %32, %82 : vector<8x32xf32>
    %84 = vector.extract_strided_slice %7 {offsets = [1, 0], sizes = [1, 32], strides = [1, 1]} : vector<3x32xf32> to vector<1x32xf32>
    %85 = vector.extract_strided_slice %8 {offsets = [1, 0], sizes = [1, 32], strides = [1, 1]} : vector<3x32xf32> to vector<1x32xf32>
    %cst_33 = arith.constant dense<0.000000e+00> : vector<8xf32>
    %86 = vector.multi_reduction <add>, %83, %cst_33 [1] : vector<8x32xf32> to vector<8xf32>
    %87 = vector.shape_cast %86 : vector<8xf32> to vector<8x1xf32>
    %cst_34 = arith.constant 3.200000e+01 : f32
    %88 = vector.broadcast %cst_34 : f32 to vector<8x1xf32>
    %89 = arith.divf %87, %88 : vector<8x1xf32>
    %90 = vector.broadcast %89 : vector<8x1xf32> to vector<8x32xf32>
    %91 = arith.subf %83, %90 : vector<8x32xf32>
    %92 = arith.mulf %91, %91 : vector<8x32xf32>
    %cst_35 = arith.constant dense<0.000000e+00> : vector<8xf32>
    %93 = vector.multi_reduction <add>, %92, %cst_35 [1] : vector<8x32xf32> to vector<8xf32>
    %94 = vector.shape_cast %93 : vector<8xf32> to vector<8x1xf32>
    %cst_36 = arith.constant 3.200000e+01 : f32
    %95 = vector.broadcast %cst_36 : f32 to vector<8x1xf32>
    %96 = arith.divf %94, %95 : vector<8x1xf32>
    %97 = vector.broadcast %89 : vector<8x1xf32> to vector<8x32xf32>
    %98 = arith.subf %83, %97 : vector<8x32xf32>
    %cst_37 = arith.constant 9.99999996E-13 : f32
    %99 = vector.broadcast %cst_37 : f32 to vector<8x1xf32>
    %100 = arith.addf %96, %99 : vector<8x1xf32>
    %101 = math.rsqrt %100 : vector<8x1xf32>
    %102 = vector.broadcast %101 : vector<8x1xf32> to vector<8x32xf32>
    %103 = arith.mulf %98, %102 : vector<8x32xf32>
    %104 = vector.broadcast %84 : vector<1x32xf32> to vector<8x32xf32>
    %105 = arith.mulf %103, %104 : vector<8x32xf32>
    %106 = vector.broadcast %85 : vector<1x32xf32> to vector<8x32xf32>
    %107 = arith.addf %105, %106 : vector<8x32xf32>
    %108 = arith.truncf %107 : vector<8x32xf32> to vector<8x32xbf16>
    %c0_38 = arith.constant 0 : index
    %c0_39 = arith.constant 0 : index
    %109 = vector.load %arg10[%c0_38, %c0_39] : memref<32x128xbf16, #tpu.memory_space<vmem>>, vector<32x128xbf16>
    %cst_40 = arith.constant dense<0.000000e+00> : vector<8x128xf32>
    %110 = tpu.matmul %108, %109, %cst_40 {dimension_numbers = #tpu.dot_dimension_numbers<[1], [0], [0], [1], [0, 0, 1, 1], [], []>} : vector<8x32xbf16>, vector<32x128xbf16>, vector<8x128xf32> -> vector<8x128xf32>
    %c0_41 = arith.constant 0 : index
    %c0_42 = arith.constant 0 : index
    %111 = vector.load %arg11[%c0_41, %c0_42] : memref<1x128xf32, #tpu.memory_space<vmem>>, vector<1x128xf32>
    %112 = vector.broadcast %111 : vector<1x128xf32> to vector<8x128xf32>
    %113 = arith.addf %110, %112 : vector<8x128xf32>
    %114 = arith.mulf %113, %113 : vector<8x128xf32>
    %115 = arith.mulf %113, %114 : vector<8x128xf32>
    %cst_43 = arith.constant 4.471500e-02 : f32
    %116 = vector.broadcast %cst_43 : f32 to vector<8x128xf32>
    %117 = arith.mulf %116, %115 : vector<8x128xf32>
    %118 = arith.addf %113, %117 : vector<8x128xf32>
    %cst_44 = arith.constant 0.797884583 : f32
    %119 = vector.broadcast %cst_44 : f32 to vector<8x128xf32>
    %120 = arith.mulf %119, %118 : vector<8x128xf32>
    %121 = math.tanh %120 : vector<8x128xf32>
    %cst_45 = arith.constant 1.000000e+00 : f32
    %122 = vector.broadcast %cst_45 : f32 to vector<8x128xf32>
    %123 = arith.addf %122, %121 : vector<8x128xf32>
    %cst_46 = arith.constant 5.000000e-01 : f32
    %124 = vector.broadcast %cst_46 : f32 to vector<8x128xf32>
    %125 = arith.mulf %124, %123 : vector<8x128xf32>
    %126 = arith.mulf %113, %125 : vector<8x128xf32>
    %127 = arith.truncf %126 : vector<8x128xf32> to vector<8x128xbf16>
    %c0_47 = arith.constant 0 : index
    %c0_48 = arith.constant 0 : index
    %128 = vector.load %arg12[%c0_47, %c0_48] : memref<128x32xbf16, #tpu.memory_space<vmem>>, vector<128x32xbf16>
    %cst_49 = arith.constant dense<0.000000e+00> : vector<8x32xf32>
    %129 = tpu.matmul %127, %128, %cst_49 {dimension_numbers = #tpu.dot_dimension_numbers<[1], [0], [0], [1], [0, 0, 1, 1], [], []>} : vector<8x128xbf16>, vector<128x32xbf16>, vector<8x32xf32> -> vector<8x32xf32>
    %c0_50 = arith.constant 0 : index
    %c0_51 = arith.constant 0 : index
    %130 = vector.load %arg13[%c0_50, %c0_51] : memref<1x32xf32, #tpu.memory_space<vmem>>, vector<1x32xf32>
    %131 = vector.broadcast %130 : vector<1x32xf32> to vector<8x32xf32>
    %132 = arith.addf %129, %131 : vector<8x32xf32>
    %133 = arith.addf %107, %132 : vector<8x32xf32>
    %134 = vector.extract_strided_slice %7 {offsets = [2, 0], sizes = [1, 32], strides = [1, 1]} : vector<3x32xf32> to vector<1x32xf32>
    %135 = vector.extract_strided_slice %8 {offsets = [2, 0], sizes = [1, 32], strides = [1, 1]} : vector<3x32xf32> to vector<1x32xf32>
    %cst_52 = arith.constant dense<0.000000e+00> : vector<8xf32>
    %136 = vector.multi_reduction <add>, %133, %cst_52 [1] : vector<8x32xf32> to vector<8xf32>
    %137 = vector.shape_cast %136 : vector<8xf32> to vector<8x1xf32>
    %cst_53 = arith.constant 3.200000e+01 : f32
    %138 = vector.broadcast %cst_53 : f32 to vector<8x1xf32>
    %139 = arith.divf %137, %138 : vector<8x1xf32>
    %140 = vector.broadcast %139 : vector<8x1xf32> to vector<8x32xf32>
    %141 = arith.subf %133, %140 : vector<8x32xf32>
    %142 = arith.mulf %141, %141 : vector<8x32xf32>
    %cst_54 = arith.constant dense<0.000000e+00> : vector<8xf32>
    %143 = vector.multi_reduction <add>, %142, %cst_54 [1] : vector<8x32xf32> to vector<8xf32>
    %144 = vector.shape_cast %143 : vector<8xf32> to vector<8x1xf32>
    %cst_55 = arith.constant 3.200000e+01 : f32
    %145 = vector.broadcast %cst_55 : f32 to vector<8x1xf32>
    %146 = arith.divf %144, %145 : vector<8x1xf32>
    %147 = vector.broadcast %139 : vector<8x1xf32> to vector<8x32xf32>
    %148 = arith.subf %133, %147 : vector<8x32xf32>
    %cst_56 = arith.constant 9.99999996E-13 : f32
    %149 = vector.broadcast %cst_56 : f32 to vector<8x1xf32>
    %150 = arith.addf %146, %149 : vector<8x1xf32>
    %151 = math.rsqrt %150 : vector<8x1xf32>
    %152 = vector.broadcast %151 : vector<8x1xf32> to vector<8x32xf32>
    %153 = arith.mulf %148, %152 : vector<8x32xf32>
    %154 = vector.broadcast %134 : vector<1x32xf32> to vector<8x32xf32>
    %155 = arith.mulf %153, %154 : vector<8x32xf32>
    %156 = vector.broadcast %135 : vector<1x32xf32> to vector<8x32xf32>
    %157 = arith.addf %155, %156 : vector<8x32xf32>
    %158 = vector.shape_cast %6 : vector<1x8xf32> to vector<1x8x1xf32>
    %159 = vector.shape_cast %157 : vector<8x32xf32> to vector<1x8x32xf32>
    %160 = vector.broadcast %158 : vector<1x8x1xf32> to vector<1x8x32xf32>
    %161 = arith.mulf %159, %160 : vector<1x8x32xf32>
    %cst_57 = arith.constant dense<0.000000e+00> : vector<1x32xf32>
    %162 = vector.multi_reduction <add>, %161, %cst_57 [1] : vector<1x8x32xf32> to vector<1x32xf32>
    %cst_58 = arith.constant dense<0.000000e+00> : vector<1x1xf32>
    %163 = vector.multi_reduction <add>, %158, %cst_58 [1] : vector<1x8x1xf32> to vector<1x1xf32>
    %cst_59 = arith.constant 9.99999971E-10 : f32
    %164 = vector.broadcast %cst_59 : f32 to vector<1x1xf32>
    %165 = arith.maximumf %163, %164 : vector<1x1xf32>
    %166 = vector.broadcast %165 : vector<1x1xf32> to vector<1x32xf32>
    %167 = arith.divf %162, %166 : vector<1x32xf32>
    %168 = arith.truncf %167 : vector<1x32xf32> to vector<1x32xbf16>
    %c0_60 = arith.constant 0 : index
    %c0_61 = arith.constant 0 : index
    %169 = vector.load %arg14[%c0_60, %c0_61] : memref<32x128xbf16, #tpu.memory_space<vmem>>, vector<32x128xbf16>
    %cst_62 = arith.constant dense<0.000000e+00> : vector<1x128xf32>
    %170 = tpu.matmul %168, %169, %cst_62 {dimension_numbers = #tpu.dot_dimension_numbers<[1], [0], [0], [1], [0, 0, 1, 1], [], []>} : vector<1x32xbf16>, vector<32x128xbf16>, vector<1x128xf32> -> vector<1x128xf32>
    %c0_63 = arith.constant 0 : index
    %c0_64 = arith.constant 0 : index
    %171 = vector.load %arg15[%c0_63, %c0_64] : memref<1x128xf32, #tpu.memory_space<vmem>>, vector<1x128xf32>
    %172 = arith.addf %170, %171 : vector<1x128xf32>
    %c0_65 = arith.constant 0 : index
    %c0_66 = arith.constant 0 : index
    %c0_67 = arith.constant 0 : index
    %173 = vector.load %arg16[%c0_65, %c0_66, %c0_67] : memref<1x1x128xf32, #tpu.memory_space<vmem>>, vector<1x1x128xf32>
    %174 = vector.shape_cast %173 : vector<1x1x128xf32> to vector<1x128xf32>
    %175 = vector.shape_cast %172 : vector<1x128xf32> to vector<1x1x128xf32>
    tpu.vector_store %arg16[%c0_65, %c0_66, %c0_67], %175 {strides = array<i32>} : memref<1x1x128xf32, #tpu.memory_space<vmem>>, vector<1x1x128xf32>,
    return
  }
  func.func @transform_0(%arg0: i32) -> (i32, i32, i32) {
    %c0_i32 = arith.constant 0 : i32
    %c0_i32_0 = arith.constant 0 : i32
    %c0_i32_1 = arith.constant 0 : i32
    return %arg0, %c0_i32, %c0_i32_0 : i32, i32, i32
  }
  func.func @transform_1(%arg0: i32) -> (i32, i32, i32) {
    %c0_i32 = arith.constant 0 : i32
    %c0_i32_0 = arith.constant 0 : i32
    %c0_i32_1 = arith.constant 0 : i32
    return %arg0, %c0_i32, %c0_i32_0 : i32, i32, i32
  }
  func.func @transform_2(%arg0: i32) -> (i32, i32, i32) {
    %c0_i32 = arith.constant 0 : i32
    %c0_i32_0 = arith.constant 0 : i32
    %c0_i32_1 = arith.constant 0 : i32
    return %arg0, %c0_i32, %c0_i32_0 : i32, i32, i32
  }
  func.func @transform_3(%arg0: i32) -> (i32, i32) {
    %c0_i32 = arith.constant 0 : i32
    %c0_i32_0 = arith.constant 0 : i32
    %c0_i32_1 = arith.constant 0 : i32
    return %c0_i32, %c0_i32_0 : i32, i32
  }
  func.func @transform_4(%arg0: i32) -> (i32, i32) {
    %c0_i32 = arith.constant 0 : i32
    %c0_i32_0 = arith.constant 0 : i32
    %c0_i32_1 = arith.constant 0 : i32
    return %c0_i32, %c0_i32_0 : i32, i32
  }
  func.func @transform_5(%arg0: i32) -> (i32, i32) {
    %c0_i32 = arith.constant 0 : i32
    %c0_i32_0 = arith.constant 0 : i32
    %c0_i32_1 = arith.constant 0 : i32
    return %c0_i32, %c0_i32_0 : i32, i32
  }
  func.func @transform_6(%arg0: i32) -> (i32, i32) {
    %c0_i32 = arith.constant 0 : i32
    %c0_i32_0 = arith.constant 0 : i32
    %c0_i32_1 = arith.constant 0 : i32
    return %c0_i32, %c0_i32_0 : i32, i32
  }
  func.func @transform_7(%arg0: i32) -> (i32, i32) {
    %c0_i32 = arith.constant 0 : i32
    %c0_i32_0 = arith.constant 0 : i32
    %c0_i32_1 = arith.constant 0 : i32
    return %c0_i32, %c0_i32_0 : i32, i32
  }
  func.func @transform_8(%arg0: i32) -> (i32, i32) {
    %c0_i32 = arith.constant 0 : i32
    %c0_i32_0 = arith.constant 0 : i32
    %c0_i32_1 = arith.constant 0 : i32
    return %c0_i32, %c0_i32_0 : i32, i32
  }
  func.func @transform_9(%arg0: i32) -> (i32, i32) {
    %c0_i32 = arith.constant 0 : i32
    %c0_i32_0 = arith.constant 0 : i32
    %c0_i32_1 = arith.constant 0 : i32
    return %c0_i32, %c0_i32_0 : i32, i32
  }
  func.func @transform_10(%arg0: i32) -> (i32, i32) {
    %c0_i32 = arith.constant 0 : i32
    %c0_i32_0 = arith.constant 0 : i32
    %c0_i32_1 = arith.constant 0 : i32
    return %c0_i32, %c0_i32_0 : i32, i32
  }
  func.func @transform_11(%arg0: i32) -> (i32, i32) {
    %c0_i32 = arith.constant 0 : i32
    %c0_i32_0 = arith.constant 0 : i32
    %c0_i32_1 = arith.constant 0 : i32
    return %c0_i32, %c0_i32_0 : i32, i32
  }
  func.func @transform_12(%arg0: i32) -> (i32, i32) {
    %c0_i32 = arith.constant 0 : i32
    %c0_i32_0 = arith.constant 0 : i32
    %c0_i32_1 = arith.constant 0 : i32
    return %c0_i32, %c0_i32_0 : i32, i32
  }
  func.func @transform_13(%arg0: i32) -> (i32, i32) {
    %c0_i32 = arith.constant 0 : i32
    %c0_i32_0 = arith.constant 0 : i32
    %c0_i32_1 = arith.constant 0 : i32
    return %c0_i32, %c0_i32_0 : i32, i32
  }
  func.func @transform_14(%arg0: i32) -> (i32, i32) {
    %c0_i32 = arith.constant 0 : i32
    %c0_i32_0 = arith.constant 0 : i32
    %c0_i32_1 = arith.constant 0 : i32
    return %c0_i32, %c0_i32_0 : i32, i32
  }
  func.func @transform_15(%arg0: i32) -> (i32, i32, i32) {
    %c0_i32 = arith.constant 0 : i32
    %c0_i32_0 = arith.constant 0 : i32
    %c0_i32_1 = arith.constant 0 : i32
    return %arg0, %c0_i32, %c0_i32_0 : i32, i32, i32
  }
}

</mosaic_0001>

<bundles_post_ra>
// kernel: commonlit_forward.1
= control target key start
LH: loop header
LB: loop body
LE: loop exit
PB: predicated region body
PF: predicated region fallthrough
CT: control target
= control target key end

     0   :  { %s2089_s0 = inlined_call_operand.vmem [shape: bf16[2,8,32], index: 0, kind: input, shape index: {}]   ;;  %s2090_s1 = inlined_call_operand.vmem [shape: f32[2,1,8], index: 1, kind: input, shape index: {}]   ;;  %s2091_s2 = inlined_call_operand.vmem [shape: f32[2,1,8], index: 2, kind: input, shape index: {}]   ;;  %s2092_s3 = inlined_call_operand.vmem [shape: f32[3,32], index: 3, kind: input, shape index: {}]   ;;  %s2093_s4 = inlined_call_operand.vmem [shape: f32[3,32], index: 4, kind: input, shape index: {}]   ;;  %s2094_s5 = inlined_call_operand.vmem [shape: bf16[32,96], index: 5, kind: input, shape index: {}]   ;;  %s2095_s6 = inlined_call_operand.vmem [shape: f32[1,96], index: 6, kind: input, shape index: {}]   ;;  %s2096_s7 = inlined_call_operand.vmem [shape: bf16[32,32], index: 7, kind: input, shape index: {}]   ;;  %s2097_s8 = inlined_call_operand.vmem [shape: f32[1,32], index: 8, kind: input, shape index: {}]   ;;  %s2098_s9 = inlined_call_operand.vmem [shape: bf16[32,128], index: 9, kind: input, shape index: {}]   ;;  %s2099_s10 = inlined_call_operand.vmem [shape: f32[1,128], index: 10, kind: input, shape index: {}]   ;;  %s2100_s11 = inlined_call_operand.vmem [shape: bf16[128,32], index: 11, kind: input, shape index: {}]   ;;  %s2101_s12 = inlined_call_operand.vmem [shape: f32[1,32], index: 12, kind: input, shape index: {}]   ;;  %s2102_s13 = inlined_call_operand.vmem [shape: bf16[32,128], index: 13, kind: input, shape index: {}]   ;;  %s2103_s14 = inlined_call_operand.vmem [shape: f32[1,128], index: 14, kind: input, shape index: {}]   ;;  %s2104_s15 = inlined_call_operand.hbm [shape: f32[2,1,128], index: 15, kind: output, shape index: {}]  }
   0x1   :  { %2105 = sst [smem:[#allocation5_spill]] %s2089_s0 }
   0x2   :  { %2106 = sst [smem:[#allocation6_spill]] %s2090_s1 }
   0x3   :  { %2107 = sst [smem:[#allocation7_spill]] %s2091_s2 }
   0x4   :  { %2108 = sst [smem:[#allocation8_spill]] %s2092_s3 }
   0x5   :  { %2109 = sst [smem:[#allocation9_spill]] %s2093_s4 }
   0x6   :  { %2110 = sst [smem:[#allocation10_spill]] %s2094_s5 }
   0x7   :  { %20 = vsyncpa [#allocation3], 0 }
   0x8   :  { %22 = vsyncpa [#allocation3 + $0x1], 0  ;;  %s1765_s18 = smov 0   ;;  %s1767_s19 = smov 0  }
   0x9   :  { %s1769_s20 = smov 0   ;;  %s1771_s21 = smov 0  }
   0xa LB: > { %s1786_s22 = sadd.s32 4294967295, %s1676_s21   ;;  %s1447_s23 = sadd.s32 4294967294, %s1676_s21   ;;  %s1676_s21 = sphi %s1771_s21, %s2122_s21   ;;  %s1672_s20 = sphi %s1769_s20, %s2121_s20   ;;  %s1668_s19 = sphi %s1767_s19, %s2120_s19   ;;  %s1664_s18 = sphi %s1765_s18, %s2119_s18  }
   0xb   : > { %s1790_s24 = sadd.s32 1, %s1676_s21   ;;  %s365_s25 = sadd.s32 1, %s1672_s20 }
   0xc   : > { %s362_s26 = ssub.s32 %s1676_s21, %s1790_s24  ;;  %p375_p0 = scmp.ne.s32.totalorder %s1672_s20, %s1668_s19 }
   0xd   : > { %p363_p1 = scmp.eq.s32.totalorder %s362_s26, 0  ;;  %p376_p2 = scmp.eq.s32.totalorder %s1786_s22, 1 }
   0xe   : > { %p381_p3 = scmp.ne.s32.totalorder %s1668_s19, %s1664_s18  ;;  %p382_p4 = scmp.eq.s32.totalorder %s1447_s23, 1 }
   0xf   : > { %s1801_s27 = scalar_select %p363_p1, %s1672_s20, %s365_s25  }
  0x10   : > { %p1803_p5 = por %p376_p2, %p375_p0  ;;  %p1807_p6 = por %p382_p4, %p381_p3 }
  0x11   : > { %p1450_p7 = scmp.ge.s32.totalorder %s1676_s21, 1  ;;  %p455_p8 = scmp.lt.s32.totalorder %s1676_s21, 3 }
  0x13   : > { %p456_p9 = pnand %p1450_p7, %p455_p8 }
  0x14   : > { %p507_p10 = scmp.lt.s32.totalorder (!%p456_p9), %s1786_s22, 1  ;;  %s2113_s0 = sld [smem:[#allocation5_spill]] (!%p456_p9) }
  0x15   : > { %459 = sbr.rel (%p456_p9) target bundleno = 2461 (0x99d), region = 80  ;;  %s2114_s5 = sld [smem:[#allocation10_spill]] (!%p456_p9) }
  0x16   : > { %s2115_s3 = sld [smem:[#allocation8_spill]] (!%p456_p9)  ;;  %s1679_s26 = smov (!%p456_p9), 112  }
  0x17   : > { %s2116_s4 = sld [smem:[#allocation9_spill]] (!%p456_p9)  ;;  %s1681_s17 = smov (!%p456_p9), 64  }
  0x18   : > { %s2117_s1 = sld [smem:[#allocation6_spill]] (!%p456_p9) }
  0x19   : > { %s2118_s2 = sld [smem:[#allocation7_spill]] (!%p456_p9) }
  0x1a   : > { %s1815_s30 = scalar_select %p507_p10, %s1786_s22, 1  ;;  %vm524_vm0 = vcmask 261120   ;;  %v1678_v3 = vmov 32.0   ;;  %v1589_v35 = vld [vmem:[%s2095_s6] ss:$0 sm:$0xff]  ;;  %vm614_vm5 = vcmask 1047556  }
  0x1b   : > { %1594 = vrcp.f32 %v1678_v3  ;;  %v1527_v15 = vld [vmem:[%s2114_s5 + $0x8] sm:$0xff]  ;;  %v1526_v16 = vld [vmem:[%s2114_s5] sm:$0xff]  ;;  %v1682_v44 = vmov 1983009808   ;;  %v1683_v46 = vmov 1934713408  }
  0x1c   : > { %s1451_s16 = sshll.u32 %s1815_s30, 2  ;;  %588 = vmatpush.bf16.msra.mxu0 %v1527_v15  ;;  %v1836_v25 = vld [vmem:[%s2115_s3] sm:$0x7]  ;;  %v610_v45 = vunpack.c.l.s4 %v1682_v44  ;;  %v617_v47 = vunpack.c.l.s4 %v1683_v46  ;;  %vm871_vm6 = vcmask 130048   ;;  %vm910_vm7 = vcmask 64512   ;;  %s1370_s3 = scalar_lea.hbm %s2104_s15, %s1786_s22 }
  0x1d   : > { %s510_s25 = scalar_lea.vmem %s2113_s0, %s1451_s16  ;;  %v1841_v27 = vld [vmem:[%s2116_s4] sm:$0x7]  ;;  %v554_v28 = vperm.slane %v1836_v25, 0  ;;  %s1680_s16 = smov 96   ;;  %vm938_vm8 = vcmask 1043456  }
  0x1e   : > { %v518_v0 = vld [vmem:[%s510_s25] sm:$0xf]  ;;  %v556_v31 = vperm.slane %v1841_v27, 0  ;;  %v1857_v49 = vunpack.c.0.s8 %v610_v45  ;;  %v1859_v52 = vunpack.c.0.s8 %v617_v47  ;;  %s1374_s23 = sshll.u32 %s1370_s3, 4  ;;  %s1375_s23 = int_to_ptr.hbm [resolvable:$true] %s1374_s23 }
  0x1f   : > { %v519_v1 = vunpack.c.l.bf16 %v518_v0  ;;  %s516_s4 = scalar_lea.vmem %s2118_s2, %s1815_s30 }
  0x20   : > { %589 = vmatpush.bf16.msra.mxu0 %v1526_v16 }
  0x21   : > { %v525_v2 = vsel %vm524_vm0, %v519_v1, 0.0  ;;  %v1595_v4 = vpop.eup %1594 }
  0x22   : > { %526 = vadd.xlane.f32.xlu0 %v525_v2  ;;  %v529_v5 = vmul.f32 32.0, %v1595_v4  ;;  %vm533_vm1 = vweird.f32 %v1595_v4 }
  0x24   : > { %v530_v6 = vsub.f32 1.0, %v529_v5 }
  0x26   : > { %v531_v7 = vmul.f32 %v1595_v4, %v530_v6 }
  0x28   : > { %v532_v8 = vadd.f32 %v1595_v4, %v531_v7 }
  0x2a   : > { %v1822_v9 = vsel %vm533_vm1, %v1595_v4, %v532_v8 }
  0x95   : > { %v527_v10 = vpop.xlane.xlu0 %526 }
  0x96   : > { %v535_v11 = vmul.f32 %v1822_v9, %v527_v10 }
  0x98   : > { %v536_v12 = vsub.f32 %v519_v1, %v535_v11 }
  0x9a   : > { %v537_v13 = vmul.f32 %v536_v12, %v536_v12 }
  0x9c   : > { %v538_v14 = vsel %vm524_vm0, %v537_v13, 0.0 }
  0x9d   : > { %539 = vadd.xlane.f32.xlu0 %v538_v14 }
 0x110   : > { %v540_v17 = vpop.xlane.xlu0 %539 }
 0x111   : > { %v541_v18 = vmul.f32 %v540_v17, %v1822_v9 }
 0x113   : > { %v542_v19 = vadd.f32 1e-12, %v541_v18 }
 0x115   : > { %1596 = vrsqrt.f32 %v542_v19  ;;  %vm549_vm3 = vweird.f32 %v542_v19 }
 0x11b   : > { %v1597_v20 = vpop.eup %1596 }
 0x11c   : > { %v544_v21 = vmul.f32 %v1597_v20, %v542_v19  ;;  %vm550_vm2 = vweird.f32 %v1597_v20 }
 0x11d   : > { %vm551_vm4 = vmor %vm549_vm3, %vm550_vm2 }
 0x11e   : > { %v545_v22 = vmul.f32 %v1597_v20, %v544_v21 }
 0x120   : > { %v546_v23 = vmul.f32 0.5, %v545_v22 }
 0x122   : > { %v547_v24 = vsub.f32 1.5, %v546_v23 }
 0x124   : > { %v548_v26 = vmul.f32 %v1597_v20, %v547_v24 }
 0x126   : > { %v552_v29 = vsel %vm551_vm4, %v1597_v20, %v548_v26 }
 0x127   : > { %v553_v30 = vmul.f32 %v552_v29, %v536_v12 }
 0x129   : > { %v555_v32 = vmul.f32 %v554_v28, %v553_v30 }
 0x12b   : > { %v1845_v33 = vadd.f32 %v556_v31, %v555_v32 }
 0x12d   : > { %v558_v34 = vpack.c.bf16 %v1845_v33, %v1845_v33 }
 0x12f   : > { %1460 = vmatmul.msk.bf16.vlgmr.msra.gmra.mxu0 %vm524_vm0, %v558_v34 }
 0x1ac   : > { %v591_v36 = vpop.f32.mrf.mxu0 }
 0x1ad   : > { %v592_v37 = vadd.f32 %v1589_v35, %v591_v36 }
 0x1af   : > { %v595_v38 = vpack.c.bf16 %v592_v37, %v592_v37 }
 0x1b1   : > { %688 = vrot.lane.b32.xlu1 %v595_v38, %s1679_s26  ;;  %v596_v40 = vunpack.c.l.bf16 %v595_v38 }
 0x1b3   : > { %v597_v42 = vmul.f32 0.25, %v596_v40 }
 0x1b4   : > { %v593_v39 = vpop.f32.mrf.mxu0 }
 0x1b5   : > { %v598_v43 = vpack.c.bf16 %v597_v42, %v597_v42 }
 0x1b7   : > { %v605_v6 = vshrl.u32 %v598_v43, 16 }
 0x1b9   : > { %690 = vrot.lane.b32.xlu1 %v595_v38, %s1680_s16 }
 0x223   : > { %v1853_v41 = vpop.permute.xlu1 %688 }
 0x224   : > { %692 = vrot.lane.b32.xlu2 %v1853_v41, %s1680_s16  ;;  %s505_s16 = sand.u32 1, %s1668_s19  }
 0x225   : > { %s506_s0 = scalar_lea.vmem [#allocation2], %s505_s16  ;;  %s1362_s25 = scalar_lea.sflag [#allocation3], %s505_s16 }
 0x22b   : > { %v691_v48 = vpop.permute.xlu1 %690 }
 0x22c   : > { %600 = vrot.lane.b32.xlu2 %v598_v43, %s1679_s26  ;;  %v697_v51 = vshrl.u32 %v691_v48, 16  ;;  %s513_s26 = scalar_lea.vmem %s2117_s1, %s1815_s30  ;;  %s1372_s30 = sshll.u32 %s506_s0, 4  ;;  %s1373_s30 = int_to_ptr.vmem [resolvable:$true] %s1372_s30 }
 0x22d   : > { %s1634_s1 = scalar_lea.hbm %s2104_s15, 2 }
 0x234   : > { %778 = vrot.lane.b32.xlu2 %v595_v38, %s1681_s17 }
 0x27e   : > { %v693_v50 = vpop.permute.xlu2 %692 }
 0x27f   : > { %v696_v53 = vpack.i.b16 %v693_v50, %v691_v48  ;;  %v698_v54 = vshrl.u32 %v693_v50, 16 }
 0x281   : > { %v699_v55 = vpack.i.b16 %v698_v54, %v697_v51  ;;  %v704_v56 = vperm.slane %v696_v53, %v1857_v49 }
 0x283   : > { %v705_v57 = vrot.slane %v704_v56, 4  ;;  %v710_v58 = vperm.slane %v704_v56, %v1859_v52  ;;  %v723_v59 = vperm.slane %v699_v55, %v1857_v49 }
 0x285   : > { %v706_v60 = vsel %vm614_vm5, 0, %v705_v57  ;;  %v724_v61 = vrot.slane %v723_v59, 4  ;;  %v729_v63 = vperm.slane %v723_v59, %v1859_v52  ;;  %v715_v1 = vrot.slane %v710_v58, 4 }
 0x286   : > { %v714_v62 = vperm.slane %v706_v60, %v1859_v52  ;;  %v601_v0 = vpop.permute.xlu2 %600 }
 0x287   : > { %v725_v2 = vsel %vm614_vm5, 0, %v724_v61  ;;  %v604_v3 = vpack.i.b16 %v601_v0, %v598_v43  ;;  %v606_v7 = vshrl.u32 %v601_v0, 16  ;;  %v734_v11 = vrot.slane %v729_v63, 4 }
 0x288   : > { %v717_v4 = vrot.slane %v714_v62, 4  ;;  %v733_v5 = vperm.slane %v725_v2, %v1859_v52  ;;  %v716_v14 = vsel %vm614_vm5, 0, %v715_v1 }
 0x289   : > { %v612_v8 = vperm.slane %v604_v3, %v1857_v49  ;;  %v607_v13 = vpack.i.b16 %v606_v7, %v605_v6  ;;  %v735_v24 = vsel %vm614_vm5, 0, %v734_v11 }
 0x28a   : > { %v718_v10 = vsel %vm614_vm5, 0, %v717_v4  ;;  %v736_v12 = vrot.slane %v733_v5, 4  ;;  %v738_v20 = vsel %vm614_vm5, %v717_v4, %v710_v58 }
 0x28b   : > { %v743_v15 = vrot.slane %v718_v10, 4  ;;  %v613_v16 = vrot.slane %v612_v8, 4  ;;  %v619_v18 = vperm.slane %v612_v8, %v1859_v52  ;;  %v632_v19 = vperm.slane %v607_v13, %v1857_v49 }
 0x28c   : > { %v737_v17 = vsel %vm614_vm5, 0, %v736_v12  ;;  %v742_v31 = vperm.slane %v738_v20, %v1857_v49  ;;  %v755_v39 = vsel %vm614_vm5, %v736_v12, %v729_v63 }
 0x28d   : > { %v760_v21 = vrot.slane %v737_v17, 4  ;;  %v615_v22 = vsel %vm614_vm5, 0, %v613_v16  ;;  %v744_v23 = vsel %vm614_vm5, %v743_v15, %v716_v14  ;;  %v633_v28 = vrot.slane %v632_v19, 4 }
 0x28e   : > { %v623_v26 = vperm.slane %v615_v22, %v1859_v52  ;;  %v748_v29 = vperm.slane %v744_v23, %v1857_v49  ;;  %v638_v30 = vperm.slane %v632_v19, %v1859_v52  ;;  %v624_v34 = vrot.slane %v619_v18, 4  ;;  %v520_v19 = vld [vmem:[%s513_s26] sm:$0x1]  ;;  %s1684_s26 = smov 16  }
 0x28f   : > { %v761_v32 = vsel %vm614_vm5, %v760_v21, %v735_v24  ;;  %v634_v36 = vsel %vm614_vm5, 0, %v633_v28  ;;  %v759_v48 = vperm.slane %v755_v39, %v1857_v49  ;;  %v866_v20 = vsub.f32 1.0, %v520_v19 }
 0x290   : > { %v626_v35 = vrot.slane %v623_v26, 4  ;;  %v749_v37 = vrot.slane %v748_v29, 4  ;;  %v642_v38 = vperm.slane %v634_v36, %v1859_v52  ;;  %v765_v40 = vperm.slane %v761_v32, %v1857_v49 }
 0x291   : > { %v643_v44 = vrot.slane %v638_v30, 4  ;;  %v625_v47 = vsel %vm614_vm5, 0, %v624_v34  ;;  %v867_v21 = vmul.f32 -1e+09, %v866_v20 }
 0x292   : > { %v627_v42 = vsel %vm614_vm5, 0, %v626_v35  ;;  %v750_v43 = vsel %vm614_vm5, %v749_v37, %v742_v31  ;;  %v645_v45 = vrot.slane %v642_v38, 4  ;;  %v766_v50 = vrot.slane %v765_v40, 4 }
 0x293   : > { %v652_v46 = vrot.slane %v627_v42, 4  ;;  %v647_v53 = vsel %vm614_vm5, %v626_v35, %v619_v18  ;;  %v754_v55 = vperm.slane %v750_v43, %v1859_v52  ;;  %v644_v59 = vsel %vm614_vm5, 0, %v643_v44  ;;  %v779_v43 = vpop.permute.xlu2 %778 }
 0x294   : > { %v646_v51 = vsel %vm614_vm5, 0, %v645_v45  ;;  %v767_v57 = vsel %vm614_vm5, %v766_v50, %v759_v48  ;;  %v651_v61 = vperm.slane %v647_v53, %v1857_v49  ;;  %v664_v62 = vsel %vm614_vm5, %v645_v45, %v638_v30 }
 0x295   : > { %v653_v54 = vsel %vm614_vm5, %v652_v46, %v625_v47  ;;  %v669_v56 = vrot.slane %v646_v51, 4  ;;  %v771_v60 = vperm.slane %v767_v57, %v1859_v52  ;;  %v775_v2 = vshrl.u32 %v754_v55, 16 }
 0x296   : > { %v657_v58 = vperm.slane %v653_v54, %v1857_v49  ;;  %v668_v8 = vperm.slane %v664_v62, %v1857_v49  ;;  %v869_v22 = vperm.slane %v867_v21, 0  ;;  %v785_v46 = vshrl.u32 %v779_v43, 16 }
 0x297   : > { %v670_v0 = vsel %vm614_vm5, %v669_v56, %v644_v59  ;;  %v774_v1 = vpack.i.b16 %v771_v60, %v754_v55  ;;  %v776_v3 = vshrl.u32 %v771_v60, 16 }
 0x298   : > { %v658_v63 = vrot.slane %v657_v58, 4  ;;  %v674_v4 = vperm.slane %v670_v0, %v1857_v49 }
 0x299   : > { %v876_v6 = vsel %vm871_vm6, %v774_v1, 0  ;;  %v777_v7 = vpack.i.b16 %v776_v3, %v775_v2 }
 0x29a   : > { %v659_v5 = vsel %vm614_vm5, %v658_v63, %v651_v61  ;;  %v675_v10 = vrot.slane %v674_v4, 4  ;;  %885 = vmatpush.bf16.xpose.msra.mxu1 %v876_v6 }
 0x29b   : > { %v663_v11 = vperm.slane %v659_v5, %v1859_v52  ;;  %v895_v12 = vsel %vm871_vm6, %v777_v7, 0 }
 0x29c   : > { %v676_v13 = vsel %vm614_vm5, %v675_v10, %v668_v8  ;;  %904 = vmatpush.bf16.xpose.msra.mxu2 %v895_v12 }
 0x29d   : > { %v680_v14 = vperm.slane %v676_v13, %v1859_v52  ;;  %v684_v16 = vshrl.u32 %v663_v11, 16 }
 0x29f   : > { %v683_v15 = vpack.i.b16 %v680_v14, %v663_v11  ;;  %v685_v17 = vshrl.u32 %v680_v14, 16 }
 0x2a1   : > { %v686_v18 = vpack.i.b16 %v685_v17, %v684_v16  ;;  %1461 = vmatmul.msk.bf16.vlgmr.msra.gmra.mxu1 %vm871_vm6, %v683_v15 }
 0x2a3   : > { %1462 = vmatmul.msk.bf16.vlgmr.msra.gmra.mxu2 %vm871_vm6, %v686_v18 }
 0x31e   : > { %v887_v23 = vpop.f32.mrf.mxu1 }
 0x31f   : > { %v888_v24 = vadd.f32 %v887_v23, %v869_v22 }
 0x321   : > { %v911_v26 = vsel %vm910_vm7, %v888_v24, -inf }
 0x322   : > { %912 = vmax.xlane.f32.xlu0 %v911_v26 }
 0x326   : > { %v889_v28 = vpop.f32.mrf.mxu1  ;;  %v906_v29 = vpop.f32.mrf.mxu2 }
 0x327   : > { %v907_v30 = vadd.f32 %v906_v29, %v869_v22 }
 0x329   : > { %v914_v31 = vsel %vm910_vm7, %v907_v30, -inf }
 0x32a   : > { %915 = vmax.xlane.f32.xlu1 %v914_v31 }
 0x32e   : > { %v908_v32 = vpop.f32.mrf.mxu2 }
 0x336   : > { %780 = vrot.lane.b32.xlu0 %v1853_v41, %s1681_s17 }
 0x395   : > { %v913_v34 = vpop.xlane.xlu0 %912 }
 0x396   : > { %v917_v35 = vsub.f32 %v888_v24, %v913_v34 }
 0x398   : > { %v919_v36 = vmul.f32 1.442695, %v917_v35 }
 0x39a   : > { %1598 = vpow2.f32 %v919_v36 }
 0x39d   : > { %v916_v37 = vpop.xlane.xlu1 %915 }
 0x39e   : > { %v918_v38 = vsub.f32 %v907_v30, %v916_v37 }
 0x3a0   : > { %v1599_v39 = vpop.eup %1598  ;;  %v921_v40 = vmul.f32 1.442695, %v918_v38 }
 0x3a1   : > { %v923_v42 = vsel %vm910_vm7, %v1599_v39, 0.0 }
 0x3a2   : > { %1600 = vpow2.f32 %v921_v40  ;;  %924 = vadd.xlane.f32.xlu2 %v923_v42 }
 0x3a8   : > { %v1601_v44 = vpop.eup %1600  ;;  %v781_v45 = vpop.permute.xlu0 %780 }
 0x3a9   : > { %v784_v47 = vpack.i.b16 %v781_v45, %v779_v43  ;;  %v786_v48 = vshrl.u32 %v781_v45, 16  ;;  %v926_v41 = vsel %vm910_vm7, %v1601_v44, 0.0  ;;  %v1529_v43 = vld [vmem:[%s2096_s7 + $0x8] sm:$0xff] }
 0x3aa   : > { %927 = vadd.xlane.f32.xlu0 %v926_v41  ;;  %1100 = vmatpush.bf16.msrb.mxu0 %v1529_v43 }
 0x3ab   : > { %v787_v50 = vpack.i.b16 %v786_v48, %v785_v46  ;;  %v792_v51 = vperm.slane %v784_v47, %v1857_v49 }
 0x3ad   : > { %v793_v53 = vrot.slane %v792_v51, 4  ;;  %v811_v54 = vperm.slane %v787_v50, %v1857_v49  ;;  %v798_v55 = vperm.slane %v792_v51, %v1859_v52 }
 0x3af   : > { %v794_v56 = vsel %vm614_vm5, 0, %v793_v53  ;;  %v812_v57 = vrot.slane %v811_v54, 4  ;;  %v817_v59 = vperm.slane %v811_v54, %v1859_v52  ;;  %v803_v61 = vrot.slane %v798_v55, 4 }
 0x3b0   : > { %v802_v58 = vperm.slane %v794_v56, %v1859_v52 }
 0x3b1   : > { %v813_v60 = vsel %vm614_vm5, 0, %v812_v57  ;;  %v822_v1 = vrot.slane %v817_v59, 4  ;;  %v804_v4 = vsel %vm614_vm5, 0, %v803_v61 }
 0x3b2   : > { %v805_v62 = vrot.slane %v802_v58, 4  ;;  %v821_v63 = vperm.slane %v813_v60, %v1859_v52 }
 0x3b3   : > { %v823_v10 = vsel %vm614_vm5, 0, %v822_v1 }
 0x3b4   : > { %v806_v0 = vsel %vm614_vm5, 0, %v805_v62  ;;  %v824_v2 = vrot.slane %v821_v63, 4  ;;  %v826_v7 = vsel %vm614_vm5, %v805_v62, %v798_v55 }
 0x3b5   : > { %v831_v3 = vrot.slane %v806_v0, 4  ;;  %v830_v14 = vperm.slane %v826_v7, %v1857_v49 }
 0x3b6   : > { %v825_v5 = vsel %vm614_vm5, 0, %v824_v2  ;;  %v843_v12 = vsel %vm614_vm5, %v824_v2, %v817_v59 }
 0x3b7   : > { %v848_v6 = vrot.slane %v825_v5, 4  ;;  %v832_v8 = vsel %vm614_vm5, %v831_v3, %v804_v4  ;;  %v847_v18 = vperm.slane %v843_v12, %v1857_v49 }
 0x3b8   : > { %v836_v11 = vperm.slane %v832_v8, %v1857_v49 }
 0x3b9   : > { %v849_v13 = vsel %vm614_vm5, %v848_v6, %v823_v10 }
 0x3ba   : > { %v837_v15 = vrot.slane %v836_v11, 4  ;;  %v853_v16 = vperm.slane %v849_v13, %v1857_v49 }
 0x3bc   : > { %v838_v17 = vsel %vm614_vm5, %v837_v15, %v830_v14  ;;  %v854_v19 = vrot.slane %v853_v16, 4 }
 0x3bd   : > { %v842_v20 = vperm.slane %v838_v17, %v1859_v52 }
 0x3be   : > { %v855_v21 = vsel %vm614_vm5, %v854_v19, %v847_v18 }
 0x3bf   : > { %v859_v22 = vperm.slane %v855_v21, %v1859_v52  ;;  %v863_v24 = vshrl.u32 %v842_v20, 16 }
 0x3c1   : > { %v862_v23 = vpack.i.b16 %v859_v22, %v842_v20  ;;  %v864_v26 = vshrl.u32 %v859_v22, 16 }
 0x3c3   : > { %v940_v28 = vsel %vm938_vm8, %v862_v23, 0  ;;  %v865_v29 = vpack.i.b16 %v864_v26, %v863_v24 }
 0x3c4   : > { %949 = vmatpush.bf16.msra.mxu3 %v940_v28 }
 0x3c5   : > { %v959_v30 = vsel %vm938_vm8, %v865_v29, 0 }
 0x3c8   : > { %968 = vmatpush.bf16.msrb.mxu3 %v959_v30 }
 0x415   : > { %v925_v31 = vpop.xlane.xlu2 %924 }
 0x416   : > { %1602 = vrcp.f32 %v925_v31 }
 0x41c   : > { %v1603_v32 = vpop.eup %1602 }
 0x41d   : > { %v931_v34 = vmul.f32 %v1603_v32, %v1599_v39  ;;  %v928_v35 = vpop.xlane.xlu0 %927  ;;  %v1528_v39 = vld [vmem:[%s2096_s7] sm:$0xff] }
 0x41e   : > { %1604 = vrcp.f32 %v928_v35  ;;  %1101 = vmatpush.bf16.msrb.mxu0 %v1528_v39 }
 0x41f   : > { %v933_v36 = vpack.c.bf16 %v931_v34, %v931_v34 }
 0x421   : > { %1463 = vmatmul.msk.bf16.vlgmr.msra.gmra.mxu3 %vm910_vm7, %v933_v36 }
 0x424   : > { %v1605_v37 = vpop.eup %1604 }
 0x425   : > { %v932_v38 = vmul.f32 %v1605_v37, %v1601_v44 }
 0x427   : > { %v934_v40 = vpack.c.bf16 %v932_v38, %v932_v38 }
 0x431   : > { %1464 = vmatmul.msk.bf16.vlgmr.msrb.gmra.mxu3 %vm910_vm7, %v934_v40 }
 0x4a4   : > { %v951_v42 = vpop.f32.mrf.mxu3 }
 0x4a5   : > { %v974_v46 = vrot.slane %v951_v42, 4  ;;  %v980_v48 = vperm.slane %v951_v42, %v1857_v49 }
 0x4a7   : > { %v976_v47 = vsel %vm614_vm5, 0.0, %v974_v46  ;;  %v997_v50 = vrot.slane %v980_v48, 4 }
 0x4a8   : > { %v984_v44 = vperm.slane %v976_v47, %v1857_v49 }
 0x4aa   : > { %v1009_v57 = vrot.slane %v984_v44, 4 }
 0x4ac   : > { %v953_v45 = vpop.f32.mrf.mxu3 }
 0x4b4   : > { %v970_v41 = vpop.f32.mrf.mxu3 }
 0x4b5   : > { %v985_v51 = vrot.slane %v970_v41, 4  ;;  %v990_v53 = vperm.slane %v970_v41, %v1857_v49  ;;  %v1531_v41 = vld [vmem:[%s2098_s9 + $0x8] sm:$0xff] }
 0x4b6   : > { %1164 = vmatpush.bf16.msrb.mxu1 %v1531_v41 }
 0x4b7   : > { %v986_v54 = vsel %vm614_vm5, 0.0, %v985_v51  ;;  %v995_v55 = vrot.slane %v990_v53, 4  ;;  %v998_v56 = vsel %vm614_vm5, %v990_v53, %v997_v50  ;;  %v1539_v50 = vld [vmem:[%s2100_s11 + $0x38] sm:$0xff] }
 0x4b8   : > { %v994_v58 = vperm.slane %v986_v54, %v1857_v49  ;;  %v1006_v59 = vperm.slane %v998_v56, %v1859_v52  ;;  %1249 = vmatpush.bf16.msrb.mxu2 %v1539_v50 }
 0x4b9   : > { %v996_v60 = vsel %vm614_vm5, %v995_v55, %v980_v48 }
 0x4ba   : > { %v1002_v61 = vperm.slane %v996_v60, %v1859_v52  ;;  %v1007_v62 = vrot.slane %v994_v58, 4  ;;  %v1010_v63 = vsel %vm614_vm5, %v994_v58, %v1009_v57  ;;  %v1021_v0 = vrot.slane %v1006_v59, 4 }
 0x4bb   : > { %v1018_v1 = vperm.slane %v1010_v63, %v1859_v52 }
 0x4bc   : > { %v1008_v2 = vsel %vm614_vm5, %v1007_v62, %v984_v44  ;;  %v1019_v3 = vrot.slane %v1002_v61, 4  ;;  %v1022_v4 = vsel %vm614_vm5, 0.0, %v1021_v0  ;;  %v972_v5 = vpop.f32.mrf.mxu3  ;;  %v1027_v13 = vsel %vm614_vm5, %v1021_v0, %v1002_v61 }
 0x4bd   : > { %v1014_v6 = vperm.slane %v1008_v2, %v1859_v52  ;;  %v1025_v7 = vrot.slane %v1018_v1, 4  ;;  %v1032_v8 = vrot.slane %v1022_v4, 4  ;;  %v1031_v18 = vperm.slane %v1027_v13, %v1857_v49  ;;  %v1538_v4 = vld [vmem:[%s2100_s11 + $0x30] sm:$0xff]  ;;  %v1537_v5 = vld [vmem:[%s2100_s11 + $0x28] sm:$0xff] }
 0x4be   : > { %v1020_v10 = vsel %vm614_vm5, 0.0, %v1019_v3  ;;  %v1130_v61 = vperm.slane %v1836_v25, 1  ;;  %v1132_v0 = vperm.slane %v1841_v27, 1  ;;  %1250 = vmatpush.bf16.msrb.mxu2 %v1538_v4 }
 0x4bf   : > { %v1023_v11 = vrot.slane %v1014_v6, 4  ;;  %v1026_v12 = vsel %vm614_vm5, 0.0, %v1025_v7  ;;  %v1033_v14 = vsel %vm614_vm5, %v1032_v8, %v1020_v10  ;;  %v1038_v19 = vsel %vm614_vm5, %v1025_v7, %v1014_v6  ;;  %v1536_v6 = vld [vmem:[%s2100_s11 + $0x20] sm:$0xff]  ;;  %v1535_v7 = vld [vmem:[%s2100_s11 + $0x18] sm:$0xff]  ;;  %v1534_v8 = vld [vmem:[%s2100_s11 + $0x10] sm:$0xff] }
 0x4c0   : > { %v1043_v15 = vrot.slane %v1026_v12, 4  ;;  %v1037_v16 = vperm.slane %v1033_v14, %v1857_v49  ;;  %v1042_v24 = vperm.slane %v1038_v19, %v1857_v49  ;;  %v1533_v10 = vld [vmem:[%s2100_s11 + $0x8] sm:$0xff]  ;;  %v1591_v12 = vld [vmem:[%s2099_s10] ss:$0 sm:$0xff] }
 0x4c1   : > { %v1024_v17 = vsel %vm614_vm5, 0.0, %v1023_v11  ;;  %v1532_v11 = vld [vmem:[%s2100_s11] sm:$0xff] }
 0x4c2   : > { %v1044_v20 = vsel %vm614_vm5, %v1043_v15, %v1024_v17  ;;  %v1049_v21 = vrot.slane %v1037_v16, 4  ;;  %1251 = vmatpush.bf16.msrb.mxu2 %v1537_v5 }
 0x4c3   : > { %v1048_v22 = vperm.slane %v1044_v20, %v1857_v49  ;;  %v1590_v49 = vld [vmem:[%s2097_s8] ss:$0 sm:$0xff] }
 0x4c4   : > { %v1050_v23 = vsel %vm614_vm5, %v1049_v21, %v1031_v18 }
 0x4c5   : > { %v1054_v26 = vperm.slane %v1050_v23, %v1859_v52  ;;  %v1055_v28 = vrot.slane %v1048_v22, 4 }
 0x4c6   : > { %1252 = vmatpush.bf16.msrb.mxu2 %v1536_v6 }
 0x4c7   : > { %v1056_v29 = vsel %vm614_vm5, %v1055_v28, %v1042_v24  ;;  %v1063_v30 = vrot.slane %v1054_v26, 4  ;;  %v1290_v28 = vlaneseq }
 0x4c8   : > { %v1060_v31 = vperm.slane %v1056_v29, %v1859_v52 }
 0x4c9   : > { %v1291_v29 = vshrl.u32 %v1290_v28, 7 }
 0x4ca   : > { %v1064_v32 = vsel %vm614_vm5, %v1060_v31, %v1063_v30  ;;  %v1061_v34 = vrot.slane %v1060_v31, 4  ;;  %1253 = vmatpush.bf16.msrb.mxu2 %v1535_v7  ;;  %v1592_v30 = vld [vmem:[%s2101_s12] ss:$0 sm:$0xff] }
 0x4cb   : > { %1066 = vrot.lane.b32.xlu1 %v1064_v32, %s1684_s26  ;;  %1588 = vset.pattern.permute.xlu0 %v1291_v29  ;;  %s1628_s26 = sshra.s32 %s1375_s23, 4  ;;  %s1629_s26 = int_to_ptr.hbm [resolvable:$true] %s1628_s26 }
 0x4cc   : > { %v1062_v35 = vsel %vm614_vm5, %v1061_v34, %v1054_v26  ;;  %s1630_s2 = scalar_lea.hbm %s1629_s26, 1  ;;  %p1635_p0 = scmp.lt.s32.totalorder %s1629_s26, %s2104_s15 }
 0x4cd   : > { %p1631_p11 = scmp.ne.s32.totalorder %s1629_s26, %s1630_s2  ;;  %p1636_p1 = scmp.lt.s32.totalorder %s1634_s1, %s1630_s2 }
 0x4ce   : > { %1254 = vmatpush.bf16.msrb.mxu2 %v1534_v8 }
 0x4cf   : > { %p1632_p12 = pnand %p1631_p11, %p1803_p5  ;;  %p1637_p2 = por %p1636_p1, %p1635_p0 }
 0x4d1   : > { %p1633_p13 = pneg %p1632_p12 }
 0x4d2   : > { %1255 = vmatpush.bf16.msrb.mxu2 %v1533_v10 }
 0x4d3   : > { %p1638_p3 = pnand %p1637_p2, %p1633_p13 }
 0x4d6   : > { %1256 = vmatpush.bf16.msrb.mxu2 %v1532_v11 }
 0x53d   : > { %v1067_v36 = vpop.permute.xlu1 %1066 }
 0x53e   : > { %v1069_v37 = vsel %vm871_vm6, %v1062_v35, %v1067_v36 }
 0x53f   : > { %v1070_v38 = vpack.c.bf16 %v1069_v37, %v1069_v37  ;;  %v1593_v37 = vld [vmem:[%s516_s4] ss:$0 sm:$0xff] }
 0x540   : > { %1294 = vperm.xlu0 %1588, %v1593_v37  }
 0x541   : > { %1473 = vmatmul.msk.bf16.vlgmr.msrb.gmra.mxu0 %vm524_vm0, %v1070_v38 }
 0x5be   : > { %v1103_v40 = vpop.f32.mrf.mxu0 }
 0x5bf   : > { %v1104_v42 = vadd.f32 %v1590_v49, %v1103_v40 }
 0x5c1   : > { %v1107_v52 = vadd.f32 %v1104_v42, %v1845_v33  ;;  %v1530_v33 = vld [vmem:[%s2098_s9] sm:$0xff] }
 0x5c2   : > { %1165 = vmatpush.bf16.msrb.mxu1 %v1530_v33  ;;  %v1540_v33 = vld [vmem:[%s2102_s13] sm:$0xff] }
 0x5c3   : > { %v1108_v43 = vsel %vm524_vm0, %v1107_v52, 0.0 }
 0x5c4   : > { %1109 = vadd.xlane.f32.xlu2 %v1108_v43  ;;  %v1295_v43 = vpop.permute.xlu0 %1294 }
 0x5c6   : > { %v1105_v45 = vpop.f32.mrf.mxu0 }
 0x5c7   : > { %v1304_v45 = vrot.slane %v1295_v43, 4 }
 0x637   : > { %v1110_v46 = vpop.xlane.xlu2 %1109 }
 0x638   : > { %v1111_v39 = vmul.f32 %v1110_v46, %v1822_v9  ;;  %v1305_v46 = vadd.f32 %v1304_v45, %v1295_v43 }
 0x63a   : > { %v1112_v47 = vsub.f32 %v1107_v52, %v1111_v39  ;;  %v1306_v39 = vrot.slane %v1305_v46, 2 }
 0x63c   : > { %v1113_v48 = vmul.f32 %v1112_v47, %v1112_v47 }
 0x63e   : > { %v1114_v44 = vsel %vm524_vm0, %v1113_v48, 0.0 }
 0x63f   : > { %1115 = vadd.xlane.f32.xlu2 %v1114_v44  ;;  %v1541_v44 = vld [vmem:[%s2102_s13 + $0x8] sm:$0xff] }
 0x640   : > { %1353 = vmatpush.bf16.msra.mxu3 %v1541_v44 }
 0x644   : > { %1354 = vmatpush.bf16.msra.mxu3 %v1540_v33 }
 0x6b2   : > { %v1116_v51 = vpop.xlane.xlu2 %1115 }
 0x6b3   : > { %v1117_v53 = vmul.f32 %v1116_v51, %v1822_v9 }
 0x6b5   : > { %v1118_v54 = vadd.f32 1e-12, %v1117_v53 }
 0x6b7   : > { %1606 = vrsqrt.f32 %v1118_v54  ;;  %vm1125_vm10 = vweird.f32 %v1118_v54 }
 0x6bd   : > { %v1607_v55 = vpop.eup %1606 }
 0x6be   : > { %v1120_v56 = vmul.f32 %v1607_v55, %v1118_v54  ;;  %vm1126_vm9 = vweird.f32 %v1607_v55 }
 0x6bf   : > { %vm1127_vm11 = vmor %vm1125_vm10, %vm1126_vm9 }
 0x6c0   : > { %v1121_v57 = vmul.f32 %v1607_v55, %v1120_v56 }
 0x6c2   : > { %v1122_v58 = vmul.f32 0.5, %v1121_v57 }
 0x6c4   : > { %v1123_v59 = vsub.f32 1.5, %v1122_v58 }
 0x6c6   : > { %v1124_v60 = vmul.f32 %v1607_v55, %v1123_v59 }
 0x6c8   : > { %v1128_v62 = vsel %vm1127_vm11, %v1607_v55, %v1124_v60 }
 0x6c9   : > { %v1129_v63 = vmul.f32 %v1128_v62, %v1112_v47  ;;  %v1307_v47 = vadd.f32 %v1306_v39, %v1305_v46 }
 0x6cb   : > { %v1131_v1 = vmul.f32 %v1130_v61, %v1129_v63  ;;  %v1308_v50 = vrot.slane %v1307_v47, 1  ;;  %v1285_v61 = vperm.slane %v1836_v25, 2  ;;  %v1287_v63 = vperm.slane %v1841_v27, 2 }
 0x6cd   : > { %v1133_v2 = vadd.f32 %v1132_v0, %v1131_v1  ;;  %v1309_v53 = vadd.f32 %v1308_v50, %v1307_v47 }
 0x6cf   : > { %v1134_v3 = vpack.c.bf16 %v1133_v2, %v1133_v2  ;;  %v1310_v55 = vmax.f32 %v1309_v53, 1e-09 }
 0x6d1   : > { %1482 = vmatmul.msk.bf16.vlgmr.msrb.gmra.mxu1 %vm524_vm0, %v1134_v3  ;;  %vm1316_vm15 = vweird.f32 %v1310_v55  ;;  %v1322_v11 = vand.u32 2147483648, %v1310_v55 }
 0x74e   : > { %v1167_v13 = vpop.f32.mrf.mxu1 }
 0x74f   : > { %v1168_v14 = vadd.f32 %v1591_v12, %v1167_v13  ;;  %v1320_v13 = vand.u32 2147483647, %v1310_v55 }
 0x751   : > { %v1171_v15 = vmul.f32 %v1168_v14, %v1168_v14  ;;  %vm1321_vm3 = vcmp.eq.f32.partialorder %v1320_v13, 8.507059e+37 }
 0x753   : > { %v1172_v16 = vmul.f32 %v1171_v15, %v1168_v14 }
 0x755   : > { %v1173_v17 = vmul.f32 0.044715, %v1172_v16 }
 0x756   : > { %v1169_v18 = vpop.f32.mrf.mxu1 }
 0x757   : > { %v1174_v19 = vadd.f32 %v1173_v17, %v1168_v14 }
 0x759   : > { %v1175_v20 = vmul.f32 0.7978846, %v1174_v19 }
 0x75b   : > { %1608 = vtanh.f32 %v1175_v20 }
 0x761   : > { %v1609_v21 = vpop.eup %1608 }
 0x762   : > { %v1177_v22 = vadd.f32 1.0, %v1609_v21  ;;  %v1331_v21 = vld [vmem:[%s2103_s14] sm:$0x1] }
 0x764   : > { %v1178_v23 = vmul.f32 0.5, %v1177_v22 }
 0x766   : > { %v1179_v24 = vmul.f32 %v1178_v23, %v1168_v14  ;;  %v1323_v14 = vor.u32 1.1754944e-38, %v1322_v11 }
 0x768   : > { %v1180_v26 = vpack.c.bf16 %v1179_v24, %v1179_v24 }
 0x76a   : > { %1257 = vmatmul.bf16.vlgmr.msrb.gmra.mxu2 %v1180_v26 }
 0x7ed   : > { %v1258_v31 = vpop.f32.mrf.mxu2 }
 0x7ee   : > { %v1259_v32 = vadd.f32 %v1592_v30, %v1258_v31 }
 0x7f0   : > { %v1262_v34 = vadd.f32 %v1259_v32, %v1133_v2 }
 0x7f2   : > { %v1263_v35 = vsel %vm524_vm0, %v1262_v34, 0.0 }
 0x7f3   : > { %1264 = vadd.xlane.f32.xlu2 %v1263_v35 }
 0x7f5   : > { %v1260_v36 = vpop.f32.mrf.mxu2 }
 0x866   : > { %v1265_v38 = vpop.xlane.xlu2 %1264 }
 0x867   : > { %v1266_v49 = vmul.f32 %v1265_v38, %v1822_v9 }
 0x869   : > { %v1267_v40 = vsub.f32 %v1262_v34, %v1266_v49 }
 0x86b   : > { %v1268_v42 = vmul.f32 %v1267_v40, %v1267_v40 }
 0x86d   : > { %v1269_v52 = vsel %vm524_vm0, %v1268_v42, 0.0 }
 0x86e   : > { %1270 = vadd.xlane.f32.xlu1 %v1269_v52 }
 0x8e1   : > { %v1271_v48 = vpop.xlane.xlu1 %1270 }
 0x8e2   : > { %v1272_v41 = vmul.f32 %v1271_v48, %v1822_v9 }
 0x8e4   : > { %v1273_v51 = vadd.f32 1e-12, %v1272_v41 }
 0x8e6   : > { %1610 = vrsqrt.f32 %v1273_v51  ;;  %vm1280_vm13 = vweird.f32 %v1273_v51 }
 0x8e7   : > { %1612 = vrcp.f32 %v1310_v55 }
 0x8ec   : > { %v1611_v54 = vpop.eup %1610 }
 0x8ed   : > { %v1275_v56 = vmul.f32 %v1611_v54, %v1273_v51  ;;  %vm1281_vm12 = vweird.f32 %v1611_v54  ;;  %v1613_v9 = vpop.eup %1612 }
 0x8ee   : > { %vm1282_vm14 = vmor %vm1280_vm13, %vm1281_vm12  ;;  %v1312_v1 = vmul.f32 %v1613_v9, %v1310_v55  ;;  %vm1317_vm1 = vweird.f32 %v1613_v9 }
 0x8ef   : > { %v1276_v57 = vmul.f32 %v1611_v54, %v1275_v56  ;;  %vm1318_vm2 = vmor %vm1316_vm15, %vm1317_vm1 }
 0x8f0   : > { %v1313_v4 = vsub.f32 1.0, %v1312_v1 }
 0x8f1   : > { %v1277_v58 = vmul.f32 0.5, %v1276_v57 }
 0x8f2   : > { %v1314_v7 = vmul.f32 %v1613_v9, %v1313_v4 }
 0x8f3   : > { %v1278_v59 = vsub.f32 1.5, %v1277_v58 }
 0x8f4   : > { %v1315_v12 = vadd.f32 %v1613_v9, %v1314_v7 }
 0x8f5   : > { %v1279_v60 = vmul.f32 %v1611_v54, %v1278_v59 }
 0x8f6   : > { %v1319_v16 = vsel %vm1318_vm2, %v1613_v9, %v1315_v12 }
 0x8f7   : > { %v1283_v62 = vsel %vm1282_vm14, %v1611_v54, %v1279_v60  ;;  %v1324_v18 = vsel %vm1321_vm3, %v1323_v14, %v1319_v16 }
 0x8f8   : > { %v1284_v0 = vmul.f32 %v1283_v62, %v1267_v40 }
 0x8fa   : > { %v1286_v2 = vmul.f32 %v1285_v61, %v1284_v0 }
 0x8fc   : > { %v1288_v3 = vadd.f32 %v1287_v63, %v1286_v2 }
 0x8fe   : > { %v1296_v5 = vmul.f32 %v1295_v43, %v1288_v3 }
 0x900   : > { %v1297_v6 = vsel %vm524_vm0, %v1296_v5, 0.0 }
 0x901   : > { %v1298_v8 = vrot.slane %v1297_v6, 4 }
 0x903   : > { %v1299_v10 = vadd.f32 %v1298_v8, %v1297_v6 }
 0x905   : > { %v1300_v25 = vrot.slane %v1299_v10, 2 }
 0x907   : > { %v1301_v27 = vadd.f32 %v1300_v25, %v1299_v10 }
 0x909   : > { %v1302_v15 = vrot.slane %v1301_v27, 1 }
 0x90b   : > { %v1303_v17 = vadd.f32 %v1302_v15, %v1301_v27 }
 0x90d   : > { %v1325_v19 = vmul.f32 %v1324_v18, %v1303_v17 }
 0x90f   : > { %v1326_v20 = vpack.c.bf16 %v1325_v19, %v1325_v19 }
 0x911   : > { %1523 = vmatmul.msk.bf16.vlgmr.msra.gmra.mxu3 %vm524_vm0, %v1326_v20 }
 0x994   : > { %v1356_v22 = vpop.f32.mrf.mxu3 }
 0x995   : > { %v1357_v23 = vadd.f32 %v1356_v22, %v1331_v21 }
 0x997   : > { %1360 = vst [vmem:[%s506_s0] sm:$0x1] %v1357_v23 }
 0x998   : > { %1641 = shalt.err (!%p1638_p3)
}
 0x999   : > { %1542 = dma.vmem_to_hbm [thread:$0]  (%p1803_p5), %s1373_s30, 16, %s1375_s23, %s1362_s25  }
 0x99c   : > { %v1358_v24 = vpop.f32.mrf.mxu3 }
 0x99d PF: > { %p1548_p4 = scmp.ge.s32.totalorder %s1676_s21, 2  ;;  %s1386_s16 = sand.u32 1, %s1664_s18  }
 0x99e   : > { %s1387_s3 = scalar_lea.sflag [#allocation3], %s1386_s16 }
 0x99f   : > { %p1545_p7 = pnand %p1548_p4, %p1807_p6 }
 0x9a1   : > { %p1546_p8 = pneg %p1545_p7 }
 0x9a3   : > { %1659 = dma.done.wait (%p1546_p8), %s1387_s3, 16  }
 0x9a4   : > { %1661 = vsyncadd (%p1546_p8), %s1387_s3, 4294967280  ;;  %p25_p9 = scmp.ge.s32.totalorder %s1790_s24, 4   ;;  %s2119_s18 = smov %s1668_s19 }
 0x9a5   : > { %s2120_s19 = smov %s1672_s20  ;;  %s2121_s20 = smov %s1801_s27 }
 0x9a6   : > { %s2122_s21 = smov %s1790_s24  ;;  %27 = sbr.rel (!%p25_p9) target bundleno = 10 (0xa), region = 121 }
 0x9ab   :  { %1392 = vsyncpa [#allocation3], 1 }
 0x9ac   :  { %1394 = vsyncpa [#allocation3 + $0x1], 1 }

// kernel: commonlit_forward.1
= control target key start
LH: loop header
LB: loop body
LE: loop exit
PB: predicated region body
PF: predicated region fallthrough
CT: control target
= control target key end

     0   :  { %s2089_s0 = inlined_call_operand.vmem [shape: bf16[2,8,32], index: 0, kind: input, shape index: {}]   ;;  %s2090_s1 = inlined_call_operand.vmem [shape: f32[2,1,8], index: 1, kind: input, shape index: {}]   ;;  %s2091_s2 = inlined_call_operand.vmem [shape: f32[2,1,8], index: 2, kind: input, shape index: {}]   ;;  %s2092_s3 = inlined_call_operand.vmem [shape: f32[3,32], index: 3, kind: input, shape index: {}]   ;;  %s2093_s4 = inlined_call_operand.vmem [shape: f32[3,32], index: 4, kind: input, shape index: {}]   ;;  %s2094_s5 = inlined_call_operand.vmem [shape: bf16[32,96], index: 5, kind: input, shape index: {}]   ;;  %s2095_s6 = inlined_call_operand.vmem [shape: f32[1,96], index: 6, kind: input, shape index: {}]   ;;  %s2096_s7 = inlined_call_operand.vmem [shape: bf16[32,32], index: 7, kind: input, shape index: {}]   ;;  %s2097_s8 = inlined_call_operand.vmem [shape: f32[1,32], index: 8, kind: input, shape index: {}]   ;;  %s2098_s9 = inlined_call_operand.vmem [shape: bf16[32,128], index: 9, kind: input, shape index: {}]   ;;  %s2099_s10 = inlined_call_operand.vmem [shape: f32[1,128], index: 10, kind: input, shape index: {}]   ;;  %s2100_s11 = inlined_call_operand.vmem [shape: bf16[128,32], index: 11, kind: input, shape index: {}]   ;;  %s2101_s12 = inlined_call_operand.vmem [shape: f32[1,32], index: 12, kind: input, shape index: {}]   ;;  %s2102_s13 = inlined_call_operand.vmem [shape: bf16[32,128], index: 13, kind: input, shape index: {}]   ;;  %s2103_s14 = inlined_call_operand.vmem [shape: f32[1,128], index: 14, kind: input, shape index: {}]   ;;  %s2104_s15 = inlined_call_operand.hbm [shape: f32[2,1,128], index: 15, kind: output, shape index: {}]  }
   0x1   :  { %2105 = sst [smem:[#allocation5_spill]] %s2089_s0 }
   0x2   :  { %2106 = sst [smem:[#allocation6_spill]] %s2090_s1 }
   0x3   :  { %2107 = sst [smem:[#allocation7_spill]] %s2091_s2 }
   0x4   :  { %2108 = sst [smem:[#allocation8_spill]] %s2092_s3 }
   0x5   :  { %2109 = sst [smem:[#allocation9_spill]] %s2093_s4 }
   0x6   :  { %2110 = sst [smem:[#allocation10_spill]] %s2094_s5 }
   0x7   :  { %20 = vsyncpa [#allocation3], 0 }
   0x8   :  { %22 = vsyncpa [#allocation3 + $0x1], 0  ;;  %s1765_s18 = smov 0   ;;  %s1767_s19 = smov 0  }
   0x9   :  { %s1769_s20 = smov 0   ;;  %s1771_s21 = smov 0  }
   0xa LB: > { %s1786_s22 = sadd.s32 4294967295, %s1676_s21   ;;  %s1447_s23 = sadd.s32 4294967294, %s1676_s21   ;;  %s1676_s21 = sphi %s1771_s21, %s2122_s21   ;;  %s1672_s20 = sphi %s1769_s20, %s2121_s20   ;;  %s1668_s19 = sphi %s1767_s19, %s2120_s19   ;;  %s1664_s18 = sphi %s1765_s18, %s2119_s18  }
   0xb   : > { %s1790_s24 = sadd.s32 1, %s1676_s21   ;;  %s365_s25 = sadd.s32 1, %s1672_s20 }
   0xc   : > { %s362_s26 = ssub.s32 %s1676_s21, %s1790_s24  ;;  %p375_p0 = scmp.ne.s32.totalorder %s1672_s20, %s1668_s19 }
   0xd   : > { %p363_p1 = scmp.eq.s32.totalorder %s362_s26, 0  ;;  %p376_p2 = scmp.eq.s32.totalorder %s1786_s22, 1 }
   0xe   : > { %p381_p3 = scmp.ne.s32.totalorder %s1668_s19, %s1664_s18  ;;  %p382_p4 = scmp.eq.s32.totalorder %s1447_s23, 1 }
   0xf   : > { %s1801_s27 = scalar_select %p363_p1, %s1672_s20, %s365_s25  }
  0x10   : > { %p1803_p5 = por %p376_p2, %p375_p0  ;;  %p1807_p6 = por %p382_p4, %p381_p3 }
  0x11   : > { %p1450_p7 = scmp.ge.s32.totalorder %s1676_s21, 1  ;;  %p455_p8 = scmp.lt.s32.totalorder %s1676_s21, 3 }
  0x13   : > { %p456_p9 = pnand %p1450_p7, %p455_p8 }
  0x14   : > { %p507_p10 = scmp.lt.s32.totalorder (!%p456_p9), %s1786_s22, 1  ;;  %s2113_s0 = sld [smem:[#allocation5_spill]] (!%p456_p9) }
  0x15   : > { %459 = sbr.rel (%p456_p9) target bundleno = 2461 (0x99d), region = 80  ;;  %s2114_s5 = sld [smem:[#allocation10_spill]] (!%p456_p9) }
  0x16   : > { %s2115_s3 = sld [smem:[#allocation8_spill]] (!%p456_p9)  ;;  %s1679_s26 = smov (!%p456_p9), 112  }
  0x17   : > { %s2116_s4 = sld [smem:[#allocation9_spill]] (!%p456_p9)  ;;  %s1681_s17 = smov (!%p456_p9), 64  }
  0x18   : > { %s2117_s1 = sld [smem:[#allocation6_spill]] (!%p456_p9) }
  0x19   : > { %s2118_s2 = sld [smem:[#allocation7_spill]] (!%p456_p9) }
  0x1a   : > { %s1815_s30 = scalar_select %p507_p10, %s1786_s22, 1  ;;  %vm524_vm0 = vcmask 261120   ;;  %v1678_v3 = vmov 32.0   ;;  %v1589_v35 = vld [vmem:[%s2095_s6] ss:$0 sm:$0xff]  ;;  %vm614_vm5 = vcmask 1047556  }
  0x1b   : > { %1594 = vrcp.f32 %v1678_v3  ;;  %v1527_v15 = vld [vmem:[%s2114_s5 + $0x8] sm:$0xff]  ;;  %v1526_v16 = vld [vmem:[%s2114_s5] sm:$0xff]  ;;  %v1682_v44 = vmov 1983009808   ;;  %v1683_v46 = vmov 1934713408  }
  0x1c   : > { %s1451_s16 = sshll.u32 %s1815_s30, 2  ;;  %588 = vmatpush.bf16.msra.mxu0 %v1527_v15  ;;  %v1836_v25 = vld [vmem:[%s2115_s3] sm:$0x7]  ;;  %v610_v45 = vunpack.c.l.s4 %v1682_v44  ;;  %v617_v47 = vunpack.c.l.s4 %v1683_v46  ;;  %vm871_vm6 = vcmask 130048   ;;  %vm910_vm7 = vcmask 64512   ;;  %s1370_s3 = scalar_lea.hbm %s2104_s15, %s1786_s22 }
  0x1d   : > { %s510_s25 = scalar_lea.vmem %s2113_s0, %s1451_s16  ;;  %v1841_v27 = vld [vmem:[%s2116_s4] sm:$0x7]  ;;  %v554_v28 = vperm.slane %v1836_v25, 0  ;;  %s1680_s16 = smov 96   ;;  %vm938_vm8 = vcmask 1043456  }
  0x1e   : > { %v518_v0 = vld [vmem:[%s510_s25] sm:$0xf]  ;;  %v556_v31 = vperm.slane %v1841_v27, 0  ;;  %v1857_v49 = vunpack.c.0.s8 %v610_v45  ;;  %v1859_v52 = vunpack.c.0.s8 %v617_v47  ;;  %s1374_s23 = sshll.u32 %s1370_s3, 4  ;;  %s1375_s23 = int_to_ptr.hbm [resolvable:$true] %s1374_s23 }
  0x1f   : > { %v519_v1 = vunpack.c.l.bf16 %v518_v0  ;;  %s516_s4 = scalar_lea.vmem %s2118_s2, %s1815_s30 }
  0x20   : > { %589 = vmatpush.bf16.msra.mxu0 %v1526_v16 }
  0x21   : > { %v525_v2 = vsel %vm524_vm0, %v519_v1, 0.0  ;;  %v1595_v4 = vpop.eup %1594 }
  0x22   : > { %526 = vadd.xlane.f32.xlu0 %v525_v2  ;;  %v529_v5 = vmul.f32 32.0, %v1595_v4  ;;  %vm533_vm1 = vweird.f32 %v1595_v4 }
  0x24   : > { %v530_v6 = vsub.f32 1.0, %v529_v5 }
  0x26   : > { %v531_v7 = vmul.f32 %v1595_v4, %v530_v6 }
  0x28   : > { %v532_v8 = vadd.f32 %v1595_v4, %v531_v7 }
  0x2a   : > { %v1822_v9 = vsel %vm533_vm1, %v1595_v4, %v532_v8 }
  0x95   : > { %v527_v10 = vpop.xlane.xlu0 %526 }
  0x96   : > { %v535_v11 = vmul.f32 %v1822_v9, %v527_v10 }
  0x98   : > { %v536_v12 = vsub.f32 %v519_v1, %v535_v11 }
  0x9a   : > { %v537_v13 = vmul.f32 %v536_v12, %v536_v12 }
  0x9c   : > { %v538_v14 = vsel %vm524_vm0, %v537_v13, 0.0 }
  0x9d   : > { %539 = vadd.xlane.f32.xlu0 %v538_v14 }
 0x110   : > { %v540_v17 = vpop.xlane.xlu0 %539 }
 0x111   : > { %v541_v18 = vmul.f32 %v540_v17, %v1822_v9 }
 0x113   : > { %v542_v19 = vadd.f32 1e-12, %v541_v18 }
 0x115   : > { %1596 = vrsqrt.f32 %v542_v19  ;;  %vm549_vm3 = vweird.f32 %v542_v19 }
 0x11b   : > { %v1597_v20 = vpop.eup %1596 }
 0x11c   : > { %v544_v21 = vmul.f32 %v1597_v20, %v542_v19  ;;  %vm550_vm2 = vweird.f32 %v1597_v20 }
 0x11d   : > { %vm551_vm4 = vmor %vm549_vm3, %vm550_vm2 }
 0x11e   : > { %v545_v22 = vmul.f32 %v1597_v20, %v544_v21 }
 0x120   : > { %v546_v23 = vmul.f32 0.5, %v545_v22 }
 0x122   : > { %v547_v24 = vsub.f32 1.5, %v546_v23 }
 0x124   : > { %v548_v26 = vmul.f32 %v1597_v20, %v547_v24 }
 0x126   : > { %v552_v29 = vsel %vm551_vm4, %v1597_v20, %v548_v26 }
 0x127   : > { %v553_v30 = vmul.f32 %v552_v29, %v536_v12 }
 0x129   : > { %v555_v32 = vmul.f32 %v554_v28, %v553_v30 }
 0x12b   : > { %v1845_v33 = vadd.f32 %v556_v31, %v555_v32 }
 0x12d   : > { %v558_v34 = vpack.c.bf16 %v1845_v33, %v1845_v33 }
 0x12f   : > { %1460 = vmatmul.msk.bf16.vlgmr.msra.gmra.mxu0 %vm524_vm0, %v558_v34 }
 0x1ac   : > { %v591_v36 = vpop.f32.mrf.mxu0 }
 0x1ad   : > { %v592_v37 = vadd.f32 %v1589_v35, %v591_v36 }
 0x1af   : > { %v595_v38 = vpack.c.bf16 %v592_v37, %v592_v37 }
 0x1b1   : > { %688 = vrot.lane.b32.xlu1 %v595_v38, %s1679_s26  ;;  %v596_v40 = vunpack.c.l.bf16 %v595_v38 }
 0x1b3   : > { %v597_v42 = vmul.f32 0.25, %v596_v40 }
 0x1b4   : > { %v593_v39 = vpop.f32.mrf.mxu0 }
 0x1b5   : > { %v598_v43 = vpack.c.bf16 %v597_v42, %v597_v42 }
 0x1b7   : > { %v605_v6 = vshrl.u32 %v598_v43, 16 }
 0x1b9   : > { %690 = vrot.lane.b32.xlu1 %v595_v38, %s1680_s16 }
 0x223   : > { %v1853_v41 = vpop.permute.xlu1 %688 }
 0x224   : > { %692 = vrot.lane.b32.xlu2 %v1853_v41, %s1680_s16  ;;  %s505_s16 = sand.u32 1, %s1668_s19  }
 0x225   : > { %s506_s0 = scalar_lea.vmem [#allocation2], %s505_s16  ;;  %s1362_s25 = scalar_lea.sflag [#allocation3], %s505_s16 }
 0x22b   : > { %v691_v48 = vpop.permute.xlu1 %690 }
 0x22c   : > { %600 = vrot.lane.b32.xlu2 %v598_v43, %s1679_s26  ;;  %v697_v51 = vshrl.u32 %v691_v48, 16  ;;  %s513_s26 = scalar_lea.vmem %s2117_s1, %s1815_s30  ;;  %s1372_s30 = sshll.u32 %s506_s0, 4  ;;  %s1373_s30 = int_to_ptr.vmem [resolvable:$true] %s1372_s30 }
 0x22d   : > { %s1634_s1 = scalar_lea.hbm %s2104_s15, 2 }
 0x234   : > { %778 = vrot.lane.b32.xlu2 %v595_v38, %s1681_s17 }
 0x27e   : > { %v693_v50 = vpop.permute.xlu2 %692 }
 0x27f   : > { %v696_v53 = vpack.i.b16 %v693_v50, %v691_v48  ;;  %v698_v54 = vshrl.u32 %v693_v50, 16 }
 0x281   : > { %v699_v55 = vpack.i.b16 %v698_v54, %v697_v51  ;;  %v704_v56 = vperm.slane %v696_v53, %v1857_v49 }
 0x283   : > { %v705_v57 = vrot.slane %v704_v56, 4  ;;  %v710_v58 = vperm.slane %v704_v56, %v1859_v52  ;;  %v723_v59 = vperm.slane %v699_v55, %v1857_v49 }
 0x285   : > { %v706_v60 = vsel %vm614_vm5, 0, %v705_v57  ;;  %v724_v61 = vrot.slane %v723_v59, 4  ;;  %v729_v63 = vperm.slane %v723_v59, %v1859_v52  ;;  %v715_v1 = vrot.slane %v710_v58, 4 }
 0x286   : > { %v714_v62 = vperm.slane %v706_v60, %v1859_v52  ;;  %v601_v0 = vpop.permute.xlu2 %600 }
 0x287   : > { %v725_v2 = vsel %vm614_vm5, 0, %v724_v61  ;;  %v604_v3 = vpack.i.b16 %v601_v0, %v598_v43  ;;  %v606_v7 = vshrl.u32 %v601_v0, 16  ;;  %v734_v11 = vrot.slane %v729_v63, 4 }
 0x288   : > { %v717_v4 = vrot.slane %v714_v62, 4  ;;  %v733_v5 = vperm.slane %v725_v2, %v1859_v52  ;;  %v716_v14 = vsel %vm614_vm5, 0, %v715_v1 }
 0x289   : > { %v612_v8 = vperm.slane %v604_v3, %v1857_v49  ;;  %v607_v13 = vpack.i.b16 %v606_v7, %v605_v6  ;;  %v735_v24 = vsel %vm614_vm5, 0, %v734_v11 }
 0x28a   : > { %v718_v10 = vsel %vm614_vm5, 0, %v717_v4  ;;  %v736_v12 = vrot.slane %v733_v5, 4  ;;  %v738_v20 = vsel %vm614_vm5, %v717_v4, %v710_v58 }
 0x28b   : > { %v743_v15 = vrot.slane %v718_v10, 4  ;;  %v613_v16 = vrot.slane %v612_v8, 4  ;;  %v619_v18 = vperm.slane %v612_v8, %v1859_v52  ;;  %v632_v19 = vperm.slane %v607_v13, %v1857_v49 }
 0x28c   : > { %v737_v17 = vsel %vm614_vm5, 0, %v736_v12  ;;  %v742_v31 = vperm.slane %v738_v20, %v1857_v49  ;;  %v755_v39 = vsel %vm614_vm5, %v736_v12, %v729_v63 }
 0x28d   : > { %v760_v21 = vrot.slane %v737_v17, 4  ;;  %v615_v22 = vsel %vm614_vm5, 0, %v613_v16  ;;  %v744_v23 = vsel %vm614_vm5, %v743_v15, %v716_v14  ;;  %v633_v28 = vrot.slane %v632_v19, 4 }
 0x28e   : > { %v623_v26 = vperm.slane %v615_v22, %v1859_v52  ;;  %v748_v29 = vperm.slane %v744_v23, %v1857_v49  ;;  %v638_v30 = vperm.slane %v632_v19, %v1859_v52  ;;  %v624_v34 = vrot.slane %v619_v18, 4  ;;  %v520_v19 = vld [vmem:[%s513_s26] sm:$0x1]  ;;  %s1684_s26 = smov 16  }
 0x28f   : > { %v761_v32 = vsel %vm614_vm5, %v760_v21, %v735_v24  ;;  %v634_v36 = vsel %vm614_vm5, 0, %v633_v28  ;;  %v759_v48 = vperm.slane %v755_v39, %v1857_v49  ;;  %v866_v20 = vsub.f32 1.0, %v520_v19 }
 0x290   : > { %v626_v35 = vrot.slane %v623_v26, 4  ;;  %v749_v37 = vrot.slane %v748_v29, 4  ;;  %v642_v38 = vperm.slane %v634_v36, %v1859_v52  ;;  %v765_v40 = vperm.slane %v761_v32, %v1857_v49 }
 0x291   : > { %v643_v44 = vrot.slane %v638_v30, 4  ;;  %v625_v47 = vsel %vm614_vm5, 0, %v624_v34  ;;  %v867_v21 = vmul.f32 -1e+09, %v866_v20 }
 0x292   : > { %v627_v42 = vsel %vm614_vm5, 0, %v626_v35  ;;  %v750_v43 = vsel %vm614_vm5, %v749_v37, %v742_v31  ;;  %v645_v45 = vrot.slane %v642_v38, 4  ;;  %v766_v50 = vrot.slane %v765_v40, 4 }
 0x293   : > { %v652_v46 = vrot.slane %v627_v42, 4  ;;  %v647_v53 = vsel %vm614_vm5, %v626_v35, %v619_v18  ;;  %v754_v55 = vperm.slane %v750_v43, %v1859_v52  ;;  %v644_v59 = vsel %vm614_vm5, 0, %v643_v44  ;;  %v779_v43 = vpop.permute.xlu2 %778 }
 0x294   : > { %v646_v51 = vsel %vm614_vm5, 0, %v645_v45  ;;  %v767_v57 = vsel %vm614_vm5, %v766_v50, %v759_v48  ;;  %v651_v61 = vperm.slane %v647_v53, %v1857_v49  ;;  %v664_v62 = vsel %vm614_vm5, %v645_v45, %v638_v30 }
 0x295   : > { %v653_v54 = vsel %vm614_vm5, %v652_v46, %v625_v47  ;;  %v669_v56 = vrot.slane %v646_v51, 4  ;;  %v771_v60 = vperm.slane %v767_v57, %v1859_v52  ;;  %v775_v2 = vshrl.u32 %v754_v55, 16 }
 0x296   : > { %v657_v58 = vperm.slane %v653_v54, %v1857_v49  ;;  %v668_v8 = vperm.slane %v664_v62, %v1857_v49  ;;  %v869_v22 = vperm.slane %v867_v21, 0  ;;  %v785_v46 = vshrl.u32 %v779_v43, 16 }
 0x297   : > { %v670_v0 = vsel %vm614_vm5, %v669_v56, %v644_v59  ;;  %v774_v1 = vpack.i.b16 %v771_v60, %v754_v55  ;;  %v776_v3 = vshrl.u32 %v771_v60, 16 }
 0x298   : > { %v658_v63 = vrot.slane %v657_v58, 4  ;;  %v674_v4 = vperm.slane %v670_v0, %v1857_v49 }
 0x299   : > { %v876_v6 = vsel %vm871_vm6, %v774_v1, 0  ;;  %v777_v7 = vpack.i.b16 %v776_v3, %v775_v2 }
 0x29a   : > { %v659_v5 = vsel %vm614_vm5, %v658_v63, %v651_v61  ;;  %v675_v10 = vrot.slane %v674_v4, 4  ;;  %885 = vmatpush.bf16.xpose.msra.mxu1 %v876_v6 }
 0x29b   : > { %v663_v11 = vperm.slane %v659_v5, %v1859_v52  ;;  %v895_v12 = vsel %vm871_vm6, %v777_v7, 0 }
 0x29c   : > { %v676_v13 = vsel %vm614_vm5, %v675_v10, %v668_v8  ;;  %904 = vmatpush.bf16.xpose.msra.mxu2 %v895_v12 }
 0x29d   : > { %v680_v14 = vperm.slane %v676_v13, %v1859_v52  ;;  %v684_v16 = vshrl.u32 %v663_v11, 16 }
 0x29f   : > { %v683_v15 = vpack.i.b16 %v680_v14, %v663_v11  ;;  %v685_v17 = vshrl.u32 %v680_v14, 16 }
 0x2a1   : > { %v686_v18 = vpack.i.b16 %v685_v17, %v684_v16  ;;  %1461 = vmatmul.msk.bf16.vlgmr.msra.gmra.mxu1 %vm871_vm6, %v683_v15 }
 0x2a3   : > { %1462 = vmatmul.msk.bf16.vlgmr.msra.gmra.mxu2 %vm871_vm6, %v686_v18 }
 0x31e   : > { %v887_v23 = vpop.f32.mrf.mxu1 }
 0x31f   : > { %v888_v24 = vadd.f32 %v887_v23, %v869_v22 }
 0x321   : > { %v911_v26 = vsel %vm910_vm7, %v888_v24, -inf }
 0x322   : > { %912 = vmax.xlane.f32.xlu0 %v911_v26 }
 0x326   : > { %v889_v28 = vpop.f32.mrf.mxu1  ;;  %v906_v29 = vpop.f32.mrf.mxu2 }
 0x327   : > { %v907_v30 = vadd.f32 %v906_v29, %v869_v22 }
 0x329   : > { %v914_v31 = vsel %vm910_vm7, %v907_v30, -inf }
 0x32a   : > { %915 = vmax.xlane.f32.xlu1 %v914_v31 }
 0x32e   : > { %v908_v32 = vpop.f32.mrf.mxu2 }
 0x336   : > { %780 = vrot.lane.b32.xlu0 %v1853_v41, %s1681_s17 }
 0x395   : > { %v913_v34 = vpop.xlane.xlu0 %912 }
 0x396   : > { %v917_v35 = vsub.f32 %v888_v24, %v913_v34 }
 0x398   : > { %v919_v36 = vmul.f32 1.442695, %v917_v35 }
 0x39a   : > { %1598 = vpow2.f32 %v919_v36 }
 0x39d   : > { %v916_v37 = vpop.xlane.xlu1 %915 }
 0x39e   : > { %v918_v38 = vsub.f32 %v907_v30, %v916_v37 }
 0x3a0   : > { %v1599_v39 = vpop.eup %1598  ;;  %v921_v40 = vmul.f32 1.442695, %v918_v38 }
 0x3a1   : > { %v923_v42 = vsel %vm910_vm7, %v1599_v39, 0.0 }
 0x3a2   : > { %1600 = vpow2.f32 %v921_v40  ;;  %924 = vadd.xlane.f32.xlu2 %v923_v42 }
 0x3a8   : > { %v1601_v44 = vpop.eup %1600  ;;  %v781_v45 = vpop.permute.xlu0 %780 }
 0x3a9   : > { %v784_v47 = vpack.i.b16 %v781_v45, %v779_v43  ;;  %v786_v48 = vshrl.u32 %v781_v45, 16  ;;  %v926_v41 = vsel %vm910_vm7, %v1601_v44, 0.0  ;;  %v1529_v43 = vld [vmem:[%s2096_s7 + $0x8] sm:$0xff] }
 0x3aa   : > { %927 = vadd.xlane.f32.xlu0 %v926_v41  ;;  %1100 = vmatpush.bf16.msrb.mxu0 %v1529_v43 }
 0x3ab   : > { %v787_v50 = vpack.i.b16 %v786_v48, %v785_v46  ;;  %v792_v51 = vperm.slane %v784_v47, %v1857_v49 }
 0x3ad   : > { %v793_v53 = vrot.slane %v792_v51, 4  ;;  %v811_v54 = vperm.slane %v787_v50, %v1857_v49  ;;  %v798_v55 = vperm.slane %v792_v51, %v1859_v52 }
 0x3af   : > { %v794_v56 = vsel %vm614_vm5, 0, %v793_v53  ;;  %v812_v57 = vrot.slane %v811_v54, 4  ;;  %v817_v59 = vperm.slane %v811_v54, %v1859_v52  ;;  %v803_v61 = vrot.slane %v798_v55, 4 }
 0x3b0   : > { %v802_v58 = vperm.slane %v794_v56, %v1859_v52 }
 0x3b1   : > { %v813_v60 = vsel %vm614_vm5, 0, %v812_v57  ;;  %v822_v1 = vrot.slane %v817_v59, 4  ;;  %v804_v4 = vsel %vm614_vm5, 0, %v803_v61 }
 0x3b2   : > { %v805_v62 = vrot.slane %v802_v58, 4  ;;  %v821_v63 = vperm.slane %v813_v60, %v1859_v52 }
 0x3b3   : > { %v823_v10 = vsel %vm614_vm5, 0, %v822_v1 }
 0x3b4   : > { %v806_v0 = vsel %vm614_vm5, 0, %v805_v62  ;;  %v824_v2 = vrot.slane %v821_v63, 4  ;;  %v826_v7 = vsel %vm614_vm5, %v805_v62, %v798_v55 }
 0x3b5   : > { %v831_v3 = vrot.slane %v806_v0, 4  ;;  %v830_v14 = vperm.slane %v826_v7, %v1857_v49 }
 0x3b6   : > { %v825_v5 = vsel %vm614_vm5, 0, %v824_v2  ;;  %v843_v12 = vsel %vm614_vm5, %v824_v2, %v817_v59 }
 0x3b7   : > { %v848_v6 = vrot.slane %v825_v5, 4  ;;  %v832_v8 = vsel %vm614_vm5, %v831_v3, %v804_v4  ;;  %v847_v18 = vperm.slane %v843_v12, %v1857_v49 }
 0x3b8   : > { %v836_v11 = vperm.slane %v832_v8, %v1857_v49 }
 0x3b9   : > { %v849_v13 = vsel %vm614_vm5, %v848_v6, %v823_v10 }
 0x3ba   : > { %v837_v15 = vrot.slane %v836_v11, 4  ;;  %v853_v16 = vperm.slane %v849_v13, %v1857_v49 }
 0x3bc   : > { %v838_v17 = vsel %vm614_vm5, %v837_v15, %v830_v14  ;;  %v854_v19 = vrot.slane %v853_v16, 4 }
 0x3bd   : > { %v842_v20 = vperm.slane %v838_v17, %v1859_v52 }
 0x3be   : > { %v855_v21 = vsel %vm614_vm5, %v854_v19, %v847_v18 }
 0x3bf   : > { %v859_v22 = vperm.slane %v855_v21, %v1859_v52  ;;  %v863_v24 = vshrl.u32 %v842_v20, 16 }
 0x3c1   : > { %v862_v23 = vpack.i.b16 %v859_v22, %v842_v20  ;;  %v864_v26 = vshrl.u32 %v859_v22, 16 }
 0x3c3   : > { %v940_v28 = vsel %vm938_vm8, %v862_v23, 0  ;;  %v865_v29 = vpack.i.b16 %v864_v26, %v863_v24 }
 0x3c4   : > { %949 = vmatpush.bf16.msra.mxu3 %v940_v28 }
 0x3c5   : > { %v959_v30 = vsel %vm938_vm8, %v865_v29, 0 }
 0x3c8   : > { %968 = vmatpush.bf16.msrb.mxu3 %v959_v30 }
 0x415   : > { %v925_v31 = vpop.xlane.xlu2 %924 }
 0x416   : > { %1602 = vrcp.f32 %v925_v31 }
 0x41c   : > { %v1603_v32 = vpop.eup %1602 }
 0x41d   : > { %v931_v34 = vmul.f32 %v1603_v32, %v1599_v39  ;;  %v928_v35 = vpop.xlane.xlu0 %927  ;;  %v1528_v39 = vld [vmem:[%s2096_s7] sm:$0xff] }
 0x41e   : > { %1604 = vrcp.f32 %v928_v35  ;;  %1101 = vmatpush.bf16.msrb.mxu0 %v1528_v39 }
 0x41f   : > { %v933_v36 = vpack.c.bf16 %v931_v34, %v931_v34 }
 0x421   : > { %1463 = vmatmul.msk.bf16.vlgmr.msra.gmra.mxu3 %vm910_vm7, %v933_v36 }
 0x424   : > { %v1605_v37 = vpop.eup %1604 }
 0x425   : > { %v932_v38 = vmul.f32 %v1605_v37, %v1601_v44 }
 0x427   : > { %v934_v40 = vpack.c.bf16 %v932_v38, %v932_v38 }
 0x431   : > { %1464 = vmatmul.msk.bf16.vlgmr.msrb.gmra.mxu3 %vm910_vm7, %v934_v40 }
 0x4a4   : > { %v951_v42 = vpop.f32.mrf.mxu3 }
 0x4a5   : > { %v974_v46 = vrot.slane %v951_v42, 4  ;;  %v980_v48 = vperm.slane %v951_v42, %v1857_v49 }
 0x4a7   : > { %v976_v47 = vsel %vm614_vm5, 0.0, %v974_v46  ;;  %v997_v50 = vrot.slane %v980_v48, 4 }
 0x4a8   : > { %v984_v44 = vperm.slane %v976_v47, %v1857_v49 }
 0x4aa   : > { %v1009_v57 = vrot.slane %v984_v44, 4 }
 0x4ac   : > { %v953_v45 = vpop.f32.mrf.mxu3 }
 0x4b4   : > { %v970_v41 = vpop.f32.mrf.mxu3 }
 0x4b5   : > { %v985_v51 = vrot.slane %v970_v41, 4  ;;  %v990_v53 = vperm.slane %v970_v41, %v1857_v49  ;;  %v1531_v41 = vld [vmem:[%s2098_s9 + $0x8] sm:$0xff] }
 0x4b6   : > { %1164 = vmatpush.bf16.msrb.mxu1 %v1531_v41 }
 0x4b7   : > { %v986_v54 = vsel %vm614_vm5, 0.0, %v985_v51  ;;  %v995_v55 = vrot.slane %v990_v53, 4  ;;  %v998_v56 = vsel %vm614_vm5, %v990_v53, %v997_v50  ;;  %v1539_v50 = vld [vmem:[%s2100_s11 + $0x38] sm:$0xff] }
 0x4b8   : > { %v994_v58 = vperm.slane %v986_v54, %v1857_v49  ;;  %v1006_v59 = vperm.slane %v998_v56, %v1859_v52  ;;  %1249 = vmatpush.bf16.msrb.mxu2 %v1539_v50 }
 0x4b9   : > { %v996_v60 = vsel %vm614_vm5, %v995_v55, %v980_v48 }
 0x4ba   : > { %v1002_v61 = vperm.slane %v996_v60, %v1859_v52  ;;  %v1007_v62 = vrot.slane %v994_v58, 4  ;;  %v1010_v63 = vsel %vm614_vm5, %v994_v58, %v1009_v57  ;;  %v1021_v0 = vrot.slane %v1006_v59, 4 }
 0x4bb   : > { %v1018_v1 = vperm.slane %v1010_v63, %v1859_v52 }
 0x4bc   : > { %v1008_v2 = vsel %vm614_vm5, %v1007_v62, %v984_v44  ;;  %v1019_v3 = vrot.slane %v1002_v61, 4  ;;  %v1022_v4 = vsel %vm614_vm5, 0.0, %v1021_v0  ;;  %v972_v5 = vpop.f32.mrf.mxu3  ;;  %v1027_v13 = vsel %vm614_vm5, %v1021_v0, %v1002_v61 }
 0x4bd   : > { %v1014_v6 = vperm.slane %v1008_v2, %v1859_v52  ;;  %v1025_v7 = vrot.slane %v1018_v1, 4  ;;  %v1032_v8 = vrot.slane %v1022_v4, 4  ;;  %v1031_v18 = vperm.slane %v1027_v13, %v1857_v49  ;;  %v1538_v4 = vld [vmem:[%s2100_s11 + $0x30] sm:$0xff]  ;;  %v1537_v5 = vld [vmem:[%s2100_s11 + $0x28] sm:$0xff] }
 0x4be   : > { %v1020_v10 = vsel %vm614_vm5, 0.0, %v1019_v3  ;;  %v1130_v61 = vperm.slane %v1836_v25, 1  ;;  %v1132_v0 = vperm.slane %v1841_v27, 1  ;;  %1250 = vmatpush.bf16.msrb.mxu2 %v1538_v4 }
 0x4bf   : > { %v1023_v11 = vrot.slane %v1014_v6, 4  ;;  %v1026_v12 = vsel %vm614_vm5, 0.0, %v1025_v7  ;;  %v1033_v14 = vsel %vm614_vm5, %v1032_v8, %v1020_v10  ;;  %v1038_v19 = vsel %vm614_vm5, %v1025_v7, %v1014_v6  ;;  %v1536_v6 = vld [vmem:[%s2100_s11 + $0x20] sm:$0xff]  ;;  %v1535_v7 = vld [vmem:[%s2100_s11 + $0x18] sm:$0xff]  ;;  %v1534_v8 = vld [vmem:[%s2100_s11 + $0x10] sm:$0xff] }
 0x4c0   : > { %v1043_v15 = vrot.slane %v1026_v12, 4  ;;  %v1037_v16 = vperm.slane %v1033_v14, %v1857_v49  ;;  %v1042_v24 = vperm.slane %v1038_v19, %v1857_v49  ;;  %v1533_v10 = vld [vmem:[%s2100_s11 + $0x8] sm:$0xff]  ;;  %v1591_v12 = vld [vmem:[%s2099_s10] ss:$0 sm:$0xff] }
 0x4c1   : > { %v1024_v17 = vsel %vm614_vm5, 0.0, %v1023_v11  ;;  %v1532_v11 = vld [vmem:[%s2100_s11] sm:$0xff] }
 0x4c2   : > { %v1044_v20 = vsel %vm614_vm5, %v1043_v15, %v1024_v17  ;;  %v1049_v21 = vrot.slane %v1037_v16, 4  ;;  %1251 = vmatpush.bf16.msrb.mxu2 %v1537_v5 }
 0x4c3   : > { %v1048_v22 = vperm.slane %v1044_v20, %v1857_v49  ;;  %v1590_v49 = vld [vmem:[%s2097_s8] ss:$0 sm:$0xff] }
 0x4c4   : > { %v1050_v23 = vsel %vm614_vm5, %v1049_v21, %v1031_v18 }
 0x4c5   : > { %v1054_v26 = vperm.slane %v1050_v23, %v1859_v52  ;;  %v1055_v28 = vrot.slane %v1048_v22, 4 }
 0x4c6   : > { %1252 = vmatpush.bf16.msrb.mxu2 %v1536_v6 }
 0x4c7   : > { %v1056_v29 = vsel %vm614_vm5, %v1055_v28, %v1042_v24  ;;  %v1063_v30 = vrot.slane %v1054_v26, 4  ;;  %v1290_v28 = vlaneseq }
 0x4c8   : > { %v1060_v31 = vperm.slane %v1056_v29, %v1859_v52 }
 0x4c9   : > { %v1291_v29 = vshrl.u32 %v1290_v28, 7 }
 0x4ca   : > { %v1064_v32 = vsel %vm614_vm5, %v1060_v31, %v1063_v30  ;;  %v1061_v34 = vrot.slane %v1060_v31, 4  ;;  %1253 = vmatpush.bf16.msrb.mxu2 %v1535_v7  ;;  %v1592_v30 = vld [vmem:[%s2101_s12] ss:$0 sm:$0xff] }
 0x4cb   : > { %1066 = vrot.lane.b32.xlu1 %v1064_v32, %s1684_s26  ;;  %1588 = vset.pattern.permute.xlu0 %v1291_v29  ;;  %s1628_s26 = sshra.s32 %s1375_s23, 4  ;;  %s1629_s26 = int_to_ptr.hbm [resolvable:$true] %s1628_s26 }
 0x4cc   : > { %v1062_v35 = vsel %vm614_vm5, %v1061_v34, %v1054_v26  ;;  %s1630_s2 = scalar_lea.hbm %s1629_s26, 1  ;;  %p1635_p0 = scmp.lt.s32.totalorder %s1629_s26, %s2104_s15 }
 0x4cd   : > { %p1631_p11 = scmp.ne.s32.totalorder %s1629_s26, %s1630_s2  ;;  %p1636_p1 = scmp.lt.s32.totalorder %s1634_s1, %s1630_s2 }
 0x4ce   : > { %1254 = vmatpush.bf16.msrb.mxu2 %v1534_v8 }
 0x4cf   : > { %p1632_p12 = pnand %p1631_p11, %p1803_p5  ;;  %p1637_p2 = por %p1636_p1, %p1635_p0 }
 0x4d1   : > { %p1633_p13 = pneg %p1632_p12 }
 0x4d2   : > { %1255 = vmatpush.bf16.msrb.mxu2 %v1533_v10 }
 0x4d3   : > { %p1638_p3 = pnand %p1637_p2, %p1633_p13 }
 0x4d6   : > { %1256 = vmatpush.bf16.msrb.mxu2 %v1532_v11 }
 0x53d   : > { %v1067_v36 = vpop.permute.xlu1 %1066 }
 0x53e   : > { %v1069_v37 = vsel %vm871_vm6, %v1062_v35, %v1067_v36 }
 0x53f   : > { %v1070_v38 = vpack.c.bf16 %v1069_v37, %v1069_v37  ;;  %v1593_v37 = vld [vmem:[%s516_s4] ss:$0 sm:$0xff] }
 0x540   : > { %1294 = vperm.xlu0 %1588, %v1593_v37  }
 0x541   : > { %1473 = vmatmul.msk.bf16.vlgmr.msrb.gmra.mxu0 %vm524_vm0, %v1070_v38 }
 0x5be   : > { %v1103_v40 = vpop.f32.mrf.mxu0 }
 0x5bf   : > { %v1104_v42 = vadd.f32 %v1590_v49, %v1103_v40 }
 0x5c1   : > { %v1107_v52 = vadd.f32 %v1104_v42, %v1845_v33  ;;  %v1530_v33 = vld [vmem:[%s2098_s9] sm:$0xff] }
 0x5c2   : > { %1165 = vmatpush.bf16.msrb.mxu1 %v1530_v33  ;;  %v1540_v33 = vld [vmem:[%s2102_s13] sm:$0xff] }
 0x5c3   : > { %v1108_v43 = vsel %vm524_vm0, %v1107_v52, 0.0 }
 0x5c4   : > { %1109 = vadd.xlane.f32.xlu2 %v1108_v43  ;;  %v1295_v43 = vpop.permute.xlu0 %1294 }
 0x5c6   : > { %v1105_v45 = vpop.f32.mrf.mxu0 }
 0x5c7   : > { %v1304_v45 = vrot.slane %v1295_v43, 4 }
 0x637   : > { %v1110_v46 = vpop.xlane.xlu2 %1109 }
 0x638   : > { %v1111_v39 = vmul.f32 %v1110_v46, %v1822_v9  ;;  %v1305_v46 = vadd.f32 %v1304_v45, %v1295_v43 }
 0x63a   : > { %v1112_v47 = vsub.f32 %v1107_v52, %v1111_v39  ;;  %v1306_v39 = vrot.slane %v1305_v46, 2 }
 0x63c   : > { %v1113_v48 = vmul.f32 %v1112_v47, %v1112_v47 }
 0x63e   : > { %v1114_v44 = vsel %vm524_vm0, %v1113_v48, 0.0 }
 0x63f   : > { %1115 = vadd.xlane.f32.xlu2 %v1114_v44  ;;  %v1541_v44 = vld [vmem:[%s2102_s13 + $0x8] sm:$0xff] }
 0x640   : > { %1353 = vmatpush.bf16.msra.mxu3 %v1541_v44 }
 0x644   : > { %1354 = vmatpush.bf16.msra.mxu3 %v1540_v33 }
 0x6b2   : > { %v1116_v51 = vpop.xlane.xlu2 %1115 }
 0x6b3   : > { %v1117_v53 = vmul.f32 %v1116_v51, %v1822_v9 }
 0x6b5   : > { %v1118_v54 = vadd.f32 1e-12, %v1117_v53 }
 0x6b7   : > { %1606 = vrsqrt.f32 %v1118_v54  ;;  %vm1125_vm10 = vweird.f32 %v1118_v54 }
 0x6bd   : > { %v1607_v55 = vpop.eup %1606 }
 0x6be   : > { %v1120_v56 = vmul.f32 %v1607_v55, %v1118_v54  ;;  %vm1126_vm9 = vweird.f32 %v1607_v55 }
 0x6bf   : > { %vm1127_vm11 = vmor %vm1125_vm10, %vm1126_vm9 }
 0x6c0   : > { %v1121_v57 = vmul.f32 %v1607_v55, %v1120_v56 }
 0x6c2   : > { %v1122_v58 = vmul.f32 0.5, %v1121_v57 }
 0x6c4   : > { %v1123_v59 = vsub.f32 1.5, %v1122_v58 }
 0x6c6   : > { %v1124_v60 = vmul.f32 %v1607_v55, %v1123_v59 }
 0x6c8   : > { %v1128_v62 = vsel %vm1127_vm11, %v1607_v55, %v1124_v60 }
 0x6c9   : > { %v1129_v63 = vmul.f32 %v1128_v62, %v1112_v47  ;;  %v1307_v47 = vadd.f32 %v1306_v39, %v1305_v46 }
 0x6cb   : > { %v1131_v1 = vmul.f32 %v1130_v61, %v1129_v63  ;;  %v1308_v50 = vrot.slane %v1307_v47, 1  ;;  %v1285_v61 = vperm.slane %v1836_v25, 2  ;;  %v1287_v63 = vperm.slane %v1841_v27, 2 }
 0x6cd   : > { %v1133_v2 = vadd.f32 %v1132_v0, %v1131_v1  ;;  %v1309_v53 = vadd.f32 %v1308_v50, %v1307_v47 }
 0x6cf   : > { %v1134_v3 = vpack.c.bf16 %v1133_v2, %v1133_v2  ;;  %v1310_v55 = vmax.f32 %v1309_v53, 1e-09 }
 0x6d1   : > { %1482 = vmatmul.msk.bf16.vlgmr.msrb.gmra.mxu1 %vm524_vm0, %v1134_v3  ;;  %vm1316_vm15 = vweird.f32 %v1310_v55  ;;  %v1322_v11 = vand.u32 2147483648, %v1310_v55 }
 0x74e   : > { %v1167_v13 = vpop.f32.mrf.mxu1 }
 0x74f   : > { %v1168_v14 = vadd.f32 %v1591_v12, %v1167_v13  ;;  %v1320_v13 = vand.u32 2147483647, %v1310_v55 }
 0x751   : > { %v1171_v15 = vmul.f32 %v1168_v14, %v1168_v14  ;;  %vm1321_vm3 = vcmp.eq.f32.partialorder %v1320_v13, 8.507059e+37 }
 0x753   : > { %v1172_v16 = vmul.f32 %v1171_v15, %v1168_v14 }
 0x755   : > { %v1173_v17 = vmul.f32 0.044715, %v1172_v16 }
 0x756   : > { %v1169_v18 = vpop.f32.mrf.mxu1 }
 0x757   : > { %v1174_v19 = vadd.f32 %v1173_v17, %v1168_v14 }
 0x759   : > { %v1175_v20 = vmul.f32 0.7978846, %v1174_v19 }
 0x75b   : > { %1608 = vtanh.f32 %v1175_v20 }
 0x761   : > { %v1609_v21 = vpop.eup %1608 }
 0x762   : > { %v1177_v22 = vadd.f32 1.0, %v1609_v21  ;;  %v1331_v21 = vld [vmem:[%s2103_s14] sm:$0x1] }
 0x764   : > { %v1178_v23 = vmul.f32 0.5, %v1177_v22 }
 0x766   : > { %v1179_v24 = vmul.f32 %v1178_v23, %v1168_v14  ;;  %v1323_v14 = vor.u32 1.1754944e-38, %v1322_v11 }
 0x768   : > { %v1180_v26 = vpack.c.bf16 %v1179_v24, %v1179_v24 }
 0x76a   : > { %1257 = vmatmul.bf16.vlgmr.msrb.gmra.mxu2 %v1180_v26 }
 0x7ed   : > { %v1258_v31 = vpop.f32.mrf.mxu2 }
 0x7ee   : > { %v1259_v32 = vadd.f32 %v1592_v30, %v1258_v31 }
 0x7f0   : > { %v1262_v34 = vadd.f32 %v1259_v32, %v1133_v2 }
 0x7f2   : > { %v1263_v35 = vsel %vm524_vm0, %v1262_v34, 0.0 }
 0x7f3   : > { %1264 = vadd.xlane.f32.xlu2 %v1263_v35 }
 0x7f5   : > { %v1260_v36 = vpop.f32.mrf.mxu2 }
 0x866   : > { %v1265_v38 = vpop.xlane.xlu2 %1264 }
 0x867   : > { %v1266_v49 = vmul.f32 %v1265_v38, %v1822_v9 }
 0x869   : > { %v1267_v40 = vsub.f32 %v1262_v34, %v1266_v49 }
 0x86b   : > { %v1268_v42 = vmul.f32 %v1267_v40, %v1267_v40 }
 0x86d   : > { %v1269_v52 = vsel %vm524_vm0, %v1268_v42, 0.0 }
 0x86e   : > { %1270 = vadd.xlane.f32.xlu1 %v1269_v52 }
 0x8e1   : > { %v1271_v48 = vpop.xlane.xlu1 %1270 }
 0x8e2   : > { %v1272_v41 = vmul.f32 %v1271_v48, %v1822_v9 }
 0x8e4   : > { %v1273_v51 = vadd.f32 1e-12, %v1272_v41 }
 0x8e6   : > { %1610 = vrsqrt.f32 %v1273_v51  ;;  %vm1280_vm13 = vweird.f32 %v1273_v51 }
 0x8e7   : > { %1612 = vrcp.f32 %v1310_v55 }
 0x8ec   : > { %v1611_v54 = vpop.eup %1610 }
 0x8ed   : > { %v1275_v56 = vmul.f32 %v1611_v54, %v1273_v51  ;;  %vm1281_vm12 = vweird.f32 %v1611_v54  ;;  %v1613_v9 = vpop.eup %1612 }
 0x8ee   : > { %vm1282_vm14 = vmor %vm1280_vm13, %vm1281_vm12  ;;  %v1312_v1 = vmul.f32 %v1613_v9, %v1310_v55  ;;  %vm1317_vm1 = vweird.f32 %v1613_v9 }
 0x8ef   : > { %v1276_v57 = vmul.f32 %v1611_v54, %v1275_v56  ;;  %vm1318_vm2 = vmor %vm1316_vm15, %vm1317_vm1 }
 0x8f0   : > { %v1313_v4 = vsub.f32 1.0, %v1312_v1 }
 0x8f1   : > { %v1277_v58 = vmul.f32 0.5, %v1276_v57 }
 0x8f2   : > { %v1314_v7 = vmul.f32 %v1613_v9, %v1313_v4 }
 0x8f3   : > { %v1278_v59 = vsub.f32 1.5, %v1277_v58 }
 0x8f4   : > { %v1315_v12 = vadd.f32 %v1613_v9, %v1314_v7 }
 0x8f5   : > { %v1279_v60 = vmul.f32 %v1611_v54, %v1278_v59 }
 0x8f6   : > { %v1319_v16 = vsel %vm1318_vm2, %v1613_v9, %v1315_v12 }
 0x8f7   : > { %v1283_v62 = vsel %vm1282_vm14, %v1611_v54, %v1279_v60  ;;  %v1324_v18 = vsel %vm1321_vm3, %v1323_v14, %v1319_v16 }
 0x8f8   : > { %v1284_v0 = vmul.f32 %v1283_v62, %v1267_v40 }
 0x8fa   : > { %v1286_v2 = vmul.f32 %v1285_v61, %v1284_v0 }
 0x8fc   : > { %v1288_v3 = vadd.f32 %v1287_v63, %v1286_v2 }
 0x8fe   : > { %v1296_v5 = vmul.f32 %v1295_v43, %v1288_v3 }
 0x900   : > { %v1297_v6 = vsel %vm524_vm0, %v1296_v5, 0.0 }
 0x901   : > { %v1298_v8 = vrot.slane %v1297_v6, 4 }
 0x903   : > { %v1299_v10 = vadd.f32 %v1298_v8, %v1297_v6 }
 0x905   : > { %v1300_v25 = vrot.slane %v1299_v10, 2 }
 0x907   : > { %v1301_v27 = vadd.f32 %v1300_v25, %v1299_v10 }
 0x909   : > { %v1302_v15 = vrot.slane %v1301_v27, 1 }
 0x90b   : > { %v1303_v17 = vadd.f32 %v1302_v15, %v1301_v27 }
 0x90d   : > { %v1325_v19 = vmul.f32 %v1324_v18, %v1303_v17 }
 0x90f   : > { %v1326_v20 = vpack.c.bf16 %v1325_v19, %v1325_v19 }
 0x911   : > { %1523 = vmatmul.msk.bf16.vlgmr.msra.gmra.mxu3 %vm524_vm0, %v1326_v20 }
 0x994   : > { %v1356_v22 = vpop.f32.mrf.mxu3 }
 0x995   : > { %v1357_v23 = vadd.f32 %v1356_v22, %v1331_v21 }
 0x997   : > { %1360 = vst [vmem:[%s506_s0] sm:$0x1] %v1357_v23 }
 0x998   : > { %1641 = shalt.err (!%p1638_p3)
}
 0x999   : > { %1542 = dma.vmem_to_hbm [thread:$0]  (%p1803_p5), %s1373_s30, 16, %s1375_s23, %s1362_s25  }
 0x99c   : > { %v1358_v24 = vpop.f32.mrf.mxu3 }
 0x99d PF: > { %p1548_p4 = scmp.ge.s32.totalorder %s1676_s21, 2  ;;  %s1386_s16 = sand.u32 1, %s1664_s18  }
 0x99e   : > { %s1387_s3 = scalar_lea.sflag [#allocation3], %s1386_s16 }
 0x99f   : > { %p1545_p7 = pnand %p1548_p4, %p1807_p6 }
 0x9a1   : > { %p1546_p8 = pneg %p1545_p7 }
 0x9a3   : > { %1659 = dma.done.wait (%p1546_p8), %s1387_s3, 16  }
 0x9a4   : > { %1661 = vsyncadd (%p1546_p8), %s1387_s3, 4294967280  ;;  %p25_p9 = scmp.ge.s32.totalorder %s1790_s24, 4   ;;  %s2119_s18 = smov %s1668_s19 }
 0x9a5   : > { %s2120_s19 = smov %s1672_s20  ;;  %s2121_s20 = smov %s1801_s27 }
 0x9a6   : > { %s2122_s21 = smov %s1790_s24  ;;  %27 = sbr.rel (!%p25_p9) target bundleno = 10 (0xa), region = 121 }
 0x9ab   :  { %1392 = vsyncpa [#allocation3], 1 }
 0x9ac   :  { %1394 = vsyncpa [#allocation3 + $0x1], 1 }

</bundles_post_ra>
